<compile_context>
chip_gen: v7x
topology: tpu7x:2x2x1
jax: 0.10.0
libtpu: 0.0.40
codegen_flags: <defaults>
</compile_context>

<pallas_src>
import functools

import jax
import jax.numpy as jnp
from jax import lax
from jax.experimental import pallas as pl
from jax.experimental.pallas import tpu as pltpu


# ----------------------------------------------------------------------------
# Fused Pallas kernel: stacked bidirectional LSTM + MLP decoder
# ----------------------------------------------------------------------------
def _fused_lstm_mlp_kernel(*refs, seq_len, batch, hidden, n_layers):
    """Refs:
      refs[0]                      x        (S*B, F)   bf16, time-major rows (row = t*B + b)
      per layer l (3 refs each):   w_ih     (F_in, 8H) bf16, cols [i_f i_b|f_f f_b|g_f g_b|o_f o_b]
                                   b        (1, 8H)    f32,  b_ih + b_hh, same column layout
                                   w_hh     (2H, 8H)   bf16, per-direction block-diagonal
      (i/f/o columns of w_ih, w_hh, b are prescaled by 0.5 for the tanh-only trick)
      then   w_d1 (S*2H, 128) bf16 (row-permuted), b_d1 (1,128) f32,
             w_d2 (128, Np)   bf16,                b_d2 (1,Np)  f32
      out    (B, Np) f32   with Np = n_out padded to 128 lanes
      scratch: gx_scr (S, B, 8H) f32, h_scr (S*B, 2H) f32
    """
    S, B, H = seq_len, batch, hidden
    x_ref = refs[0]
    lstm_refs = refs[1:1 + 3 * n_layers]
    (w_d1_ref, b_d1_ref, w_d2_ref, b_d2_ref,
     out_ref, gx_scr, h_scr) = refs[1 + 3 * n_layers:]
    dec_h = w_d1_ref.shape[1]

    # Lane-class masks over the fused 8H-wide gate vector.  Hoisted out of all
    # loops (JAX does not CSE iota/broadcast inside unrolled loops).
    lane = lax.broadcasted_iota(jnp.int32, (B, 8 * H), 1)
    g_mask = (lane >= 4 * H) & (lane < 6 * H)           # tanh-gate (g) lanes
    bwd_mask = (((lane >= H) & (lane < 2 * H)) |
                ((lane >= 3 * H) & (lane < 4 * H)) |
                ((lane >= 5 * H) & (lane < 6 * H)) |
                (lane >= 7 * H))                        # backward-direction lanes

    dec_acc = jnp.zeros((B, dec_h), jnp.float32)        # fused decoder accumulator

    for layer in range(n_layers):
        w_ih_ref = lstm_refs[3 * layer]                 # (F_in, 8H) bf16
        b_ref = lstm_refs[3 * layer + 1]                # (1, 8H)  f32
        w_hh = lstm_refs[3 * layer + 2][...]            # (2H, 8H) bf16, loop-invariant

        if layer == 0:
            layer_in = x_ref[...]                               # (S*B, F) bf16
        else:
            layer_in = h_scr[...].astype(jnp.bfloat16)          # (S*B, 2H)

        # (1) Hoisted input-path gates: ONE MXU matmul for every timestep and
        #     both directions (bf16 operands, f32 accumulate), bias added once.
        gx = jnp.dot(layer_in, w_ih_ref[...],
                     preferred_element_type=jnp.float32) + b_ref[...]   # (S*B, 8H)

        # (2) Pre-align the backward direction in time ONCE, off the recurrence
        #     chain: gx_scr[t] = [fwd gates at time t | bwd gates at time S-1-t].
        for t in range(S):
            tb = S - 1 - t
            gx_scr[t] = jnp.where(bwd_mask,
                                  gx[tb * B:(tb + 1) * B, :],
                                  gx[t * B:(t + 1) * B, :])

        h = jnp.zeros((B, 2 * H), jnp.float32)          # [h_fwd | h_bwd]
        c = jnp.zeros((B, 2 * H), jnp.float32)
        h_bf = h.astype(jnp.bfloat16)
        last = layer == n_layers - 1

        # (3) Serial recurrence, fully unrolled.  Per step: one aligned VMEM
        #     load, one MXU matmul, ONE tanh over the full 8H gates
        #     (sigmoid(x) = 0.5*tanh(x/2) + 0.5 with pre-halved i/f/o columns),
        #     a second tanh for the cell, contiguous static gate slices.
        for t in range(S):
            tb = S - 1 - t
            gates = gx_scr[t] + jnp.dot(h_bf, w_hh,
                                        preferred_element_type=jnp.float32)  # (B, 8H)
            tnh = jnp.tanh(gates)                                            # one EUP pass
            act = jnp.where(g_mask, tnh, 0.5 * tnh + 0.5)                    # VPU select
            i_g = act[:, 0:2 * H]
            f_g = act[:, 2 * H:4 * H]
            g_g = act[:, 4 * H:6 * H]
            o_g = act[:, 6 * H:8 * H]
            c = f_g * c + i_g * g_g
            h = o_g * jnp.tanh(c)
            h_bf = h.astype(jnp.bfloat16)

            if last:
                # (4) First decoder GEMM fused into the loop; w_d1 rows were
                #     pre-permuted so block t matches [h_fwd(t) | h_bwd(S-1-t)].
                dec_acc = dec_acc + jnp.dot(
                    h_bf, w_d1_ref[pl.ds(t * 2 * H, 2 * H), :],
                    preferred_element_type=jnp.float32)
            else:
                # Scatter each direction to its original time row for the next
                # layer's hoisted matmul (store path only, off the chain).
                h_scr[pl.ds(t * B, B), pl.ds(0, H)] = h[:, 0:H]
                h_scr[pl.ds(tb * B, B), pl.ds(H, H)] = h[:, H:2 * H]

    # (5) Decoder tail: bias + ReLU + second Linear, 128-lane padded output.
    hdec = jnp.maximum(dec_acc + b_d1_ref[...], 0.0)
    out_ref[...] = (jnp.dot(hdec.astype(jnp.bfloat16), w_d2_ref[...],
                            preferred_element_type=jnp.float32) + b_d2_ref[...])


# ----------------------------------------------------------------------------
# Parameter init (deterministic, PyTorch-like uniform ranges, conventional layout)
# ----------------------------------------------------------------------------
def init_params(key, n_features, n_hidden, n_layers, seq_len, n_out):
    params = {"lstm": [], "dec": {}}
    k_lstm = 1.0 / jnp.sqrt(jnp.float32(n_hidden))

    def uni(key, shape, bound):
        return jax.random.uniform(key, shape, jnp.float32, -bound, bound)

    for layer in range(n_layers):
        in_dim = n_features if layer == 0 else 2 * n_hidden
        layer_p = {}
        for tag in ("f", "b"):  # forward / backward direction
            key, k1, k2, k3, k4 = jax.random.split(key, 5)
            # stored pre-transposed: (in_dim, 4H) and (H, 4H), gate order [i f g o];
            # bias = b_ih + b_hh
            layer_p[f"w_ih_{tag}"] = uni(k1, (in_dim, 4 * n_hidden), k_lstm)
            layer_p[f"w_hh_{tag}"] = uni(k2, (n_hidden, 4 * n_hidden), k_lstm)
            layer_p[f"b_{tag}"] = (uni(k3, (1, 4 * n_hidden), k_lstm)
                                   + uni(k4, (1, 4 * n_hidden), k_lstm))
        params["lstm"].append(layer_p)

    dec_in = n_hidden * seq_len * 2
    key, k1, k2, k3, k4 = jax.random.split(key, 5)
    bound1 = 1.0 / jnp.sqrt(jnp.float32(dec_in))
    bound2 = 1.0 / jnp.sqrt(jnp.float32(128))
    params["dec"]["w1"] = uni(k1, (dec_in, 128), bound1)   # pre-transposed
    params["dec"]["b1"] = uni(k2, (1, 128), bound1)
    params["dec"]["w2"] = uni(k3, (128, n_out), bound2)    # pre-transposed
    params["dec"]["b2"] = uni(k4, (1, n_out), bound2)
    return params


# ----------------------------------------------------------------------------
# Fused-layout parameter preparation (pure XLA, done once per call)
# ----------------------------------------------------------------------------
def _prepare_fused_params(params, n_out_pad, seq_len):
    """Bakes into the weights, at prep time:
      * gate-column permutation  [i_f i_b | f_f f_b | g_f g_b | o_f o_b]
      * 0.5 prescale of sigmoid-gate (i, f, o) columns  (tanh-only activation trick)
      * per-direction block-diagonal recurrent matrix (rows [h_fwd | h_bwd])
      * row permutation of w_d1 matching the in-loop [h_fwd(t) | h_bwd(S-1-t)] layout
      * bf16 casts for every MXU operand (biases stay f32)."""
    H = params["lstm"][0]["w_hh_f"].shape[0]
    S = seq_len

    def fuse_cols(wf, wb):
        blocks = []
        for k in range(4):                      # gate order [i f g o]
            s = 1.0 if k == 2 else 0.5          # g stays tanh; i/f/o pre-halved
            blocks.append(wf[:, k * H:(k + 1) * H] * s)
            blocks.append(wb[:, k * H:(k + 1) * H] * s)
        return jnp.concatenate(blocks, axis=-1)

    def fuse_hh(wf, wb):
        z = jnp.zeros((H, H), jnp.float32)
        blocks = []
        for k in range(4):
            s = 1.0 if k == 2 else 0.5
            top = jnp.concatenate([wf[:, k * H:(k + 1) * H] * s, z], axis=-1)  # h_fwd rows
            bot = jnp.concatenate([z, wb[:, k * H:(k + 1) * H] * s], axis=-1)  # h_bwd rows
            blocks.append(jnp.concatenate([top, bot], axis=0))                 # (2H, 2H)
        return jnp.concatenate(blocks, axis=-1)                                # (2H, 8H)

    fused = []
    for p in params["lstm"]:
        fused.append(fuse_cols(p["w_ih_f"], p["w_ih_b"]).astype(jnp.bfloat16))  # (in, 8H)
        fused.append(fuse_cols(p["b_f"], p["b_b"]))                             # (1, 8H) f32
        fused.append(fuse_hh(p["w_hh_f"], p["w_hh_b"]).astype(jnp.bfloat16))    # (2H, 8H)

    d = params["dec"]
    n_out = d["w2"].shape[1]
    # Row-permute w1 so that the contiguous 2H-row block t matches the loop-step
    # layout [h_fwd(time t) | h_bwd(time S-1-t)].
    blocks = []
    for t in range(S):
        tb = S - 1 - t
        blocks.append(d["w1"][t * 2 * H: t * 2 * H + H, :])           # fwd rows, time t
        blocks.append(d["w1"][tb * 2 * H + H: (tb + 1) * 2 * H, :])   # bwd rows, time S-1-t
    w1_perm = jnp.concatenate(blocks, axis=0).astype(jnp.bfloat16)    # (S*2H, 128)

    w2p = (jnp.zeros((d["w2"].shape[0], n_out_pad), jnp.float32)
           .at[:, :n_out].set(d["w2"]).astype(jnp.bfloat16))
    b2p = jnp.zeros((1, n_out_pad), jnp.float32).at[:, :n_out].set(d["b2"])
    return fused + [w1_perm, d["b1"], w2p, b2p]


# ----------------------------------------------------------------------------
# Forward pass (matches LSTMModule.forward, eval semantics)
# ----------------------------------------------------------------------------
@functools.partial(jax.jit, static_argnames=("n_hidden", "n_layers"))
def lstm_module_forward(params, data, *, n_hidden, n_layers):
    B, S, F = data.shape
    H = n_hidden
    n_out = params["dec"]["w2"].shape[1]
    n_out_pad = ((n_out + 127) // 128) * 128

    # Only XLA glue left outside the kernel: cast + time-major flatten of the input.
    x = (jnp.transpose(data.astype(jnp.float32), (1, 0, 2))
         .reshape(S * B, F).astype(jnp.bfloat16))
    fused = _prepare_fused_params(params, n_out_pad, S)
    inputs = [x] + fused

    # Advisory cost estimate for the XLA scheduler.
    flops = 0
    for layer in range(n_layers):
        in_dim = F if layer == 0 else 2 * H
        flops += 2 * (S * B) * in_dim * (8 * H)        # hoisted input-path gates
        flops += S * 2 * B * (2 * H) * (8 * H)         # per-step recurrent matmuls
    flops += 2 * S * B * (2 * H) * 128                 # fused decoder GEMM 1
    flops += 2 * B * 128 * n_out_pad                   # decoder GEMM 2
    transcendentals = n_layers * S * B * 10 * H        # tanh(gates) + tanh(c)
    bytes_accessed = (sum(int(a.size) * a.dtype.itemsize for a in inputs)
                      + B * n_out_pad * 4)

    kernel = functools.partial(_fused_lstm_mlp_kernel, seq_len=S, batch=B,
                               hidden=H, n_layers=n_layers)
    vmem = pl.BlockSpec(memory_space=pltpu.MemorySpace.VMEM)
    out_padded = pl.pallas_call(
        kernel,
        out_shape=jax.ShapeDtypeStruct((B, n_out_pad), jnp.float32),
        in_specs=[vmem] * len(inputs),
        out_specs=vmem,
        scratch_shapes=[
            pltpu.VMEM((S, B, 8 * H), jnp.float32),    # time-aligned hoisted gates
            pltpu.VMEM((S * B, 2 * H), jnp.float32),   # inter-layer activations
        ],
        compiler_params=pltpu.CompilerParams(vmem_limit_bytes=32 * 1024 * 1024),
        cost_estimate=pl.CostEstimate(flops=flops,
                                      transcendentals=transcendentals,
                                      bytes_accessed=bytes_accessed),
    )(*inputs)
    return out_padded[:, :n_out]


# ----------------------------------------------------------------------------
if __name__ == "__main__":
    # Small shapes consistent with the module's forward.
    batch, seq_len = 2, 8
    n_features, n_hidden, n_layers, n_out = 16, 32, 2, 10

    key = jax.random.PRNGKey(0)
    key, pk, xk = jax.random.split(key, 3)
    params = init_params(pk, n_features, n_hidden, n_layers, seq_len, n_out)
    data = jax.random.normal(xk, (batch, seq_len, n_features), jnp.float32)

    out = lstm_module_forward(params, data, n_hidden=n_hidden, n_layers=n_layers)
    out = jax.block_until_ready(out)
    assert out.shape == (batch, n_out), out.shape
    print("KERNEL_OK")
</pallas_src>

<mosaic_0001>
module attributes {stable_mosaic.version = 11 : i64} {
  func.func @_fused_lstm_mlp_kernel(%arg0: memref<16x16xbf16, #tpu.memory_space<vmem>>, %arg1: memref<16x256xbf16, #tpu.memory_space<vmem>>, %arg2: memref<1x256xf32, #tpu.memory_space<vmem>>, %arg3: memref<64x256xbf16, #tpu.memory_space<vmem>>, %arg4: memref<64x256xbf16, #tpu.memory_space<vmem>>, %arg5: memref<1x256xf32, #tpu.memory_space<vmem>>, %arg6: memref<64x256xbf16, #tpu.memory_space<vmem>>, %arg7: memref<512x128xbf16, #tpu.memory_space<vmem>>, %arg8: memref<1x128xf32, #tpu.memory_space<vmem>>, %arg9: memref<128x128xbf16, #tpu.memory_space<vmem>>, %arg10: memref<1x128xf32, #tpu.memory_space<vmem>>, %arg11: memref<2x128xf32, #tpu.memory_space<vmem>>, %arg12: memref<8x2x256xf32, #tpu.memory_space<vmem>>, %arg13: memref<16x64xf32, #tpu.memory_space<vmem>>) attributes {dimension_semantics = [], scalar_prefetch = 0 : i64, scratch_operands = 2 : i64, tpu.core_type = #tpu.core_type<tc>} {
    %0 = tpu.iota {dimensions = array<i32: 1>} : vector<2x256xi32>
    %c128_i32 = arith.constant 128 : i32
    %1 = vector.broadcast %c128_i32 : i32 to vector<2x256xi32>
    %2 = arith.cmpi sge, %0, %1 : vector<2x256xi32>
    %c192_i32 = arith.constant 192 : i32
    %3 = vector.broadcast %c192_i32 : i32 to vector<2x256xi32>
    %4 = arith.cmpi slt, %0, %3 : vector<2x256xi32>
    %5 = arith.andi %2, %4 : vector<2x256xi1>
    %c32_i32 = arith.constant 32 : i32
    %6 = vector.broadcast %c32_i32 : i32 to vector<2x256xi32>
    %7 = arith.cmpi sge, %0, %6 : vector<2x256xi32>
    %c64_i32 = arith.constant 64 : i32
    %8 = vector.broadcast %c64_i32 : i32 to vector<2x256xi32>
    %9 = arith.cmpi slt, %0, %8 : vector<2x256xi32>
    %10 = arith.andi %7, %9 : vector<2x256xi1>
    %c96_i32 = arith.constant 96 : i32
    %11 = vector.broadcast %c96_i32 : i32 to vector<2x256xi32>
    %12 = arith.cmpi sge, %0, %11 : vector<2x256xi32>
    %c128_i32_0 = arith.constant 128 : i32
    %13 = vector.broadcast %c128_i32_0 : i32 to vector<2x256xi32>
    %14 = arith.cmpi slt, %0, %13 : vector<2x256xi32>
    %15 = arith.andi %12, %14 : vector<2x256xi1>
    %16 = arith.ori %10, %15 : vector<2x256xi1>
    %c160_i32 = arith.constant 160 : i32
    %17 = vector.broadcast %c160_i32 : i32 to vector<2x256xi32>
    %18 = arith.cmpi sge, %0, %17 : vector<2x256xi32>
    %c192_i32_1 = arith.constant 192 : i32
    %19 = vector.broadcast %c192_i32_1 : i32 to vector<2x256xi32>
    %20 = arith.cmpi slt, %0, %19 : vector<2x256xi32>
    %21 = arith.andi %18, %20 : vector<2x256xi1>
    %22 = arith.ori %16, %21 : vector<2x256xi1>
    %c224_i32 = arith.constant 224 : i32
    %23 = vector.broadcast %c224_i32 : i32 to vector<2x256xi32>
    %24 = arith.cmpi sge, %0, %23 : vector<2x256xi32>
    %25 = arith.ori %22, %24 : vector<2x256xi1>
    %cst = arith.constant 0.000000e+00 : f32
    %26 = vector.broadcast %cst : f32 to vector<2x128xf32>
    %c0 = arith.constant 0 : index
    %c0_2 = arith.constant 0 : index
    %27 = vector.load %arg3[%c0, %c0_2] : memref<64x256xbf16, #tpu.memory_space<vmem>>, vector<64x256xbf16>
    %c0_3 = arith.constant 0 : index
    %c0_4 = arith.constant 0 : index
    %28 = vector.load %arg0[%c0_3, %c0_4] : memref<16x16xbf16, #tpu.memory_space<vmem>>, vector<16x16xbf16>
    %c0_5 = arith.constant 0 : index
    %c0_6 = arith.constant 0 : index
    %29 = vector.load %arg1[%c0_5, %c0_6] : memref<16x256xbf16, #tpu.memory_space<vmem>>, vector<16x256xbf16>
    %cst_7 = arith.constant dense<0.000000e+00> : vector<16x256xf32>
    %30 = tpu.matmul %28, %29, %cst_7 {dimension_numbers = #tpu.dot_dimension_numbers<[1], [0], [0], [1], [0, 0, 1, 1], [], []>} : vector<16x16xbf16>, vector<16x256xbf16>, vector<16x256xf32> -> vector<16x256xf32>
    %c0_8 = arith.constant 0 : index
    %c0_9 = arith.constant 0 : index
    %31 = vector.load %arg2[%c0_8, %c0_9] : memref<1x256xf32, #tpu.memory_space<vmem>>, vector<1x256xf32>
    %32 = vector.broadcast %31 : vector<1x256xf32> to vector<16x256xf32>
    %33 = arith.addf %30, %32 : vector<16x256xf32>
    %34 = vector.extract_strided_slice %33 {offsets = [14, 0], sizes = [2, 256], strides = [1, 1]} : vector<16x256xf32> to vector<2x256xf32>
    %35 = vector.extract_strided_slice %33 {offsets = [0, 0], sizes = [2, 256], strides = [1, 1]} : vector<16x256xf32> to vector<2x256xf32>
    %36 = arith.select %25, %34, %35 : vector<2x256xi1>, vector<2x256xf32>
    %c0_10 = arith.constant 0 : index
    %c0_11 = arith.constant 0 : index
    %c0_12 = arith.constant 0 : index
    %37 = vector.load %arg12[%c0_10, %c0_11, %c0_12] : memref<8x2x256xf32, #tpu.memory_space<vmem>>, vector<1x2x256xf32>
    %38 = vector.shape_cast %37 : vector<1x2x256xf32> to vector<2x256xf32>
    %39 = vector.shape_cast %36 : vector<2x256xf32> to vector<1x2x256xf32>
    tpu.vector_store %arg12[%c0_10, %c0_11, %c0_12], %39 {strides = array<i32>} : memref<8x2x256xf32, #tpu.memory_space<vmem>>, vector<1x2x256xf32>,
    %40 = vector.extract_strided_slice %33 {offsets = [12, 0], sizes = [2, 256], strides = [1, 1]} : vector<16x256xf32> to vector<2x256xf32>
    %41 = vector.extract_strided_slice %33 {offsets = [2, 0], sizes = [2, 256], strides = [1, 1]} : vector<16x256xf32> to vector<2x256xf32>
    %42 = arith.select %25, %40, %41 : vector<2x256xi1>, vector<2x256xf32>
    %c1 = arith.constant 1 : index
    %c0_13 = arith.constant 0 : index
    %c0_14 = arith.constant 0 : index
    %43 = vector.load %arg12[%c1, %c0_13, %c0_14] : memref<8x2x256xf32, #tpu.memory_space<vmem>>, vector<1x2x256xf32>
    %44 = vector.shape_cast %43 : vector<1x2x256xf32> to vector<2x256xf32>
    %45 = vector.shape_cast %42 : vector<2x256xf32> to vector<1x2x256xf32>
    tpu.vector_store %arg12[%c1, %c0_13, %c0_14], %45 {strides = array<i32>} : memref<8x2x256xf32, #tpu.memory_space<vmem>>, vector<1x2x256xf32>,
    %46 = vector.extract_strided_slice %33 {offsets = [10, 0], sizes = [2, 256], strides = [1, 1]} : vector<16x256xf32> to vector<2x256xf32>
    %47 = vector.extract_strided_slice %33 {offsets = [4, 0], sizes = [2, 256], strides = [1, 1]} : vector<16x256xf32> to vector<2x256xf32>
    %48 = arith.select %25, %46, %47 : vector<2x256xi1>, vector<2x256xf32>
    %c2 = arith.constant 2 : index
    %c0_15 = arith.constant 0 : index
    %c0_16 = arith.constant 0 : index
    %49 = vector.load %arg12[%c2, %c0_15, %c0_16] : memref<8x2x256xf32, #tpu.memory_space<vmem>>, vector<1x2x256xf32>
    %50 = vector.shape_cast %49 : vector<1x2x256xf32> to vector<2x256xf32>
    %51 = vector.shape_cast %48 : vector<2x256xf32> to vector<1x2x256xf32>
    tpu.vector_store %arg12[%c2, %c0_15, %c0_16], %51 {strides = array<i32>} : memref<8x2x256xf32, #tpu.memory_space<vmem>>, vector<1x2x256xf32>,
    %52 = vector.extract_strided_slice %33 {offsets = [8, 0], sizes = [2, 256], strides = [1, 1]} : vector<16x256xf32> to vector<2x256xf32>
    %53 = vector.extract_strided_slice %33 {offsets = [6, 0], sizes = [2, 256], strides = [1, 1]} : vector<16x256xf32> to vector<2x256xf32>
    %54 = arith.select %25, %52, %53 : vector<2x256xi1>, vector<2x256xf32>
    %c3 = arith.constant 3 : index
    %c0_17 = arith.constant 0 : index
    %c0_18 = arith.constant 0 : index
    %55 = vector.load %arg12[%c3, %c0_17, %c0_18] : memref<8x2x256xf32, #tpu.memory_space<vmem>>, vector<1x2x256xf32>
    %56 = vector.shape_cast %55 : vector<1x2x256xf32> to vector<2x256xf32>
    %57 = vector.shape_cast %54 : vector<2x256xf32> to vector<1x2x256xf32>
    tpu.vector_store %arg12[%c3, %c0_17, %c0_18], %57 {strides = array<i32>} : memref<8x2x256xf32, #tpu.memory_space<vmem>>, vector<1x2x256xf32>,
    %58 = vector.extract_strided_slice %33 {offsets = [6, 0], sizes = [2, 256], strides = [1, 1]} : vector<16x256xf32> to vector<2x256xf32>
    %59 = vector.extract_strided_slice %33 {offsets = [8, 0], sizes = [2, 256], strides = [1, 1]} : vector<16x256xf32> to vector<2x256xf32>
    %60 = arith.select %25, %58, %59 : vector<2x256xi1>, vector<2x256xf32>
    %c4 = arith.constant 4 : index
    %c0_19 = arith.constant 0 : index
    %c0_20 = arith.constant 0 : index
    %61 = vector.load %arg12[%c4, %c0_19, %c0_20] : memref<8x2x256xf32, #tpu.memory_space<vmem>>, vector<1x2x256xf32>
    %62 = vector.shape_cast %61 : vector<1x2x256xf32> to vector<2x256xf32>
    %63 = vector.shape_cast %60 : vector<2x256xf32> to vector<1x2x256xf32>
    tpu.vector_store %arg12[%c4, %c0_19, %c0_20], %63 {strides = array<i32>} : memref<8x2x256xf32, #tpu.memory_space<vmem>>, vector<1x2x256xf32>,
    %64 = vector.extract_strided_slice %33 {offsets = [4, 0], sizes = [2, 256], strides = [1, 1]} : vector<16x256xf32> to vector<2x256xf32>
    %65 = vector.extract_strided_slice %33 {offsets = [10, 0], sizes = [2, 256], strides = [1, 1]} : vector<16x256xf32> to vector<2x256xf32>
    %66 = arith.select %25, %64, %65 : vector<2x256xi1>, vector<2x256xf32>
    %c5 = arith.constant 5 : index
    %c0_21 = arith.constant 0 : index
    %c0_22 = arith.constant 0 : index
    %67 = vector.load %arg12[%c5, %c0_21, %c0_22] : memref<8x2x256xf32, #tpu.memory_space<vmem>>, vector<1x2x256xf32>
    %68 = vector.shape_cast %67 : vector<1x2x256xf32> to vector<2x256xf32>
    %69 = vector.shape_cast %66 : vector<2x256xf32> to vector<1x2x256xf32>
    tpu.vector_store %arg12[%c5, %c0_21, %c0_22], %69 {strides = array<i32>} : memref<8x2x256xf32, #tpu.memory_space<vmem>>, vector<1x2x256xf32>,
    %70 = vector.extract_strided_slice %33 {offsets = [2, 0], sizes = [2, 256], strides = [1, 1]} : vector<16x256xf32> to vector<2x256xf32>
    %71 = vector.extract_strided_slice %33 {offsets = [12, 0], sizes = [2, 256], strides = [1, 1]} : vector<16x256xf32> to vector<2x256xf32>
    %72 = arith.select %25, %70, %71 : vector<2x256xi1>, vector<2x256xf32>
    %c6 = arith.constant 6 : index
    %c0_23 = arith.constant 0 : index
    %c0_24 = arith.constant 0 : index
    %73 = vector.load %arg12[%c6, %c0_23, %c0_24] : memref<8x2x256xf32, #tpu.memory_space<vmem>>, vector<1x2x256xf32>
    %74 = vector.shape_cast %73 : vector<1x2x256xf32> to vector<2x256xf32>
    %75 = vector.shape_cast %72 : vector<2x256xf32> to vector<1x2x256xf32>
    tpu.vector_store %arg12[%c6, %c0_23, %c0_24], %75 {strides = array<i32>} : memref<8x2x256xf32, #tpu.memory_space<vmem>>, vector<1x2x256xf32>,
    %76 = vector.extract_strided_slice %33 {offsets = [0, 0], sizes = [2, 256], strides = [1, 1]} : vector<16x256xf32> to vector<2x256xf32>
    %77 = vector.extract_strided_slice %33 {offsets = [14, 0], sizes = [2, 256], strides = [1, 1]} : vector<16x256xf32> to vector<2x256xf32>
    %78 = arith.select %25, %76, %77 : vector<2x256xi1>, vector<2x256xf32>
    %c7 = arith.constant 7 : index
    %c0_25 = arith.constant 0 : index
    %c0_26 = arith.constant 0 : index
    %79 = vector.load %arg12[%c7, %c0_25, %c0_26] : memref<8x2x256xf32, #tpu.memory_space<vmem>>, vector<1x2x256xf32>
    %80 = vector.shape_cast %79 : vector<1x2x256xf32> to vector<2x256xf32>
    %81 = vector.shape_cast %78 : vector<2x256xf32> to vector<1x2x256xf32>
    tpu.vector_store %arg12[%c7, %c0_25, %c0_26], %81 {strides = array<i32>} : memref<8x2x256xf32, #tpu.memory_space<vmem>>, vector<1x2x256xf32>,
    %cst_27 = arith.constant 0.000000e+00 : f32
    %82 = vector.broadcast %cst_27 : f32 to vector<2x64xf32>
    %cst_28 = arith.constant 0.000000e+00 : f32
    %83 = vector.broadcast %cst_28 : f32 to vector<2x64xf32>
    %84 = arith.truncf %82 : vector<2x64xf32> to vector<2x64xbf16>
    %c0_29 = arith.constant 0 : index
    %c0_30 = arith.constant 0 : index
    %c0_31 = arith.constant 0 : index
    %85 = vector.load %arg12[%c0_29, %c0_30, %c0_31] : memref<8x2x256xf32, #tpu.memory_space<vmem>>, vector<1x2x256xf32>
    %86 = vector.shape_cast %85 : vector<1x2x256xf32> to vector<2x256xf32>
    %cst_32 = arith.constant dense<0.000000e+00> : vector<2x256xf32>
    %87 = tpu.matmul %84, %27, %cst_32 {dimension_numbers = #tpu.dot_dimension_numbers<[1], [0], [0], [1], [0, 0, 1, 1], [], []>} : vector<2x64xbf16>, vector<64x256xbf16>, vector<2x256xf32> -> vector<2x256xf32>
    %88 = arith.addf %86, %87 : vector<2x256xf32>
    %89 = math.tanh %88 : vector<2x256xf32>
    %cst_33 = arith.constant 5.000000e-01 : f32
    %90 = vector.broadcast %cst_33 : f32 to vector<2x256xf32>
    %91 = arith.mulf %90, %89 : vector<2x256xf32>
    %cst_34 = arith.constant 5.000000e-01 : f32
    %92 = vector.broadcast %cst_34 : f32 to vector<2x256xf32>
    %93 = arith.addf %91, %92 : vector<2x256xf32>
    %94 = arith.select %5, %89, %93 : vector<2x256xi1>, vector<2x256xf32>
    %95 = vector.extract_strided_slice %94 {offsets = [0, 0], sizes = [2, 64], strides = [1, 1]} : vector<2x256xf32> to vector<2x64xf32>
    %96 = vector.extract_strided_slice %94 {offsets = [0, 64], sizes = [2, 64], strides = [1, 1]} : vector<2x256xf32> to vector<2x64xf32>
    %97 = vector.extract_strided_slice %94 {offsets = [0, 128], sizes = [2, 64], strides = [1, 1]} : vector<2x256xf32> to vector<2x64xf32>
    %98 = vector.extract_strided_slice %94 {offsets = [0, 192], sizes = [2, 64], strides = [1, 1]} : vector<2x256xf32> to vector<2x64xf32>
    %99 = arith.mulf %96, %83 : vector<2x64xf32>
    %100 = arith.mulf %95, %97 : vector<2x64xf32>
    %101 = arith.addf %99, %100 : vector<2x64xf32>
    %102 = math.tanh %101 : vector<2x64xf32>
    %103 = arith.mulf %98, %102 : vector<2x64xf32>
    %104 = arith.truncf %103 : vector<2x64xf32> to vector<2x64xbf16>
    %105 = vector.extract_strided_slice %103 {offsets = [0, 0], sizes = [2, 32], strides = [1, 1]} : vector<2x64xf32> to vector<2x32xf32>
    %c0_35 = arith.constant 0 : index
    %c0_36 = arith.constant 0 : index
    %106 = vector.load %arg13[%c0_35, %c0_36] : memref<16x64xf32, #tpu.memory_space<vmem>>, vector<2x32xf32>
    tpu.vector_store %arg13[%c0_35, %c0_36], %105 {strides = array<i32>} : memref<16x64xf32, #tpu.memory_space<vmem>>, vector<2x32xf32>,
    %107 = vector.extract_strided_slice %103 {offsets = [0, 32], sizes = [2, 32], strides = [1, 1]} : vector<2x64xf32> to vector<2x32xf32>
    %c14 = arith.constant 14 : index
    %c32 = arith.constant 32 : index
    %108 = vector.load %arg13[%c14, %c32] : memref<16x64xf32, #tpu.memory_space<vmem>>, vector<2x32xf32>
    tpu.vector_store %arg13[%c14, %c32], %107 {strides = array<i32>} : memref<16x64xf32, #tpu.memory_space<vmem>>, vector<2x32xf32>,
    %c1_37 = arith.constant 1 : index
    %c0_38 = arith.constant 0 : index
    %c0_39 = arith.constant 0 : index
    %109 = vector.load %arg12[%c1_37, %c0_38, %c0_39] : memref<8x2x256xf32, #tpu.memory_space<vmem>>, vector<1x2x256xf32>
    %110 = vector.shape_cast %109 : vector<1x2x256xf32> to vector<2x256xf32>
    %cst_40 = arith.constant dense<0.000000e+00> : vector<2x256xf32>
    %111 = tpu.matmul %104, %27, %cst_40 {dimension_numbers = #tpu.dot_dimension_numbers<[1], [0], [0], [1], [0, 0, 1, 1], [], []>} : vector<2x64xbf16>, vector<64x256xbf16>, vector<2x256xf32> -> vector<2x256xf32>
    %112 = arith.addf %110, %111 : vector<2x256xf32>
    %113 = math.tanh %112 : vector<2x256xf32>
    %cst_41 = arith.constant 5.000000e-01 : f32
    %114 = vector.broadcast %cst_41 : f32 to vector<2x256xf32>
    %115 = arith.mulf %114, %113 : vector<2x256xf32>
    %cst_42 = arith.constant 5.000000e-01 : f32
    %116 = vector.broadcast %cst_42 : f32 to vector<2x256xf32>
    %117 = arith.addf %115, %116 : vector<2x256xf32>
    %118 = arith.select %5, %113, %117 : vector<2x256xi1>, vector<2x256xf32>
    %119 = vector.extract_strided_slice %118 {offsets = [0, 0], sizes = [2, 64], strides = [1, 1]} : vector<2x256xf32> to vector<2x64xf32>
    %120 = vector.extract_strided_slice %118 {offsets = [0, 64], sizes = [2, 64], strides = [1, 1]} : vector<2x256xf32> to vector<2x64xf32>
    %121 = vector.extract_strided_slice %118 {offsets = [0, 128], sizes = [2, 64], strides = [1, 1]} : vector<2x256xf32> to vector<2x64xf32>
    %122 = vector.extract_strided_slice %118 {offsets = [0, 192], sizes = [2, 64], strides = [1, 1]} : vector<2x256xf32> to vector<2x64xf32>
    %123 = arith.mulf %120, %101 : vector<2x64xf32>
    %124 = arith.mulf %119, %121 : vector<2x64xf32>
    %125 = arith.addf %123, %124 : vector<2x64xf32>
    %126 = math.tanh %125 : vector<2x64xf32>
    %127 = arith.mulf %122, %126 : vector<2x64xf32>
    %128 = arith.truncf %127 : vector<2x64xf32> to vector<2x64xbf16>
    %129 = vector.extract_strided_slice %127 {offsets = [0, 0], sizes = [2, 32], strides = [1, 1]} : vector<2x64xf32> to vector<2x32xf32>
    %c2_43 = arith.constant 2 : index
    %c0_44 = arith.constant 0 : index
    %130 = vector.load %arg13[%c2_43, %c0_44] : memref<16x64xf32, #tpu.memory_space<vmem>>, vector<2x32xf32>
    tpu.vector_store %arg13[%c2_43, %c0_44], %129 {strides = array<i32>} : memref<16x64xf32, #tpu.memory_space<vmem>>, vector<2x32xf32>,
    %131 = vector.extract_strided_slice %127 {offsets = [0, 32], sizes = [2, 32], strides = [1, 1]} : vector<2x64xf32> to vector<2x32xf32>
    %c12 = arith.constant 12 : index
    %c32_45 = arith.constant 32 : index
    %132 = vector.load %arg13[%c12, %c32_45] : memref<16x64xf32, #tpu.memory_space<vmem>>, vector<2x32xf32>
    tpu.vector_store %arg13[%c12, %c32_45], %131 {strides = array<i32>} : memref<16x64xf32, #tpu.memory_space<vmem>>, vector<2x32xf32>,
    %c2_46 = arith.constant 2 : index
    %c0_47 = arith.constant 0 : index
    %c0_48 = arith.constant 0 : index
    %133 = vector.load %arg12[%c2_46, %c0_47, %c0_48] : memref<8x2x256xf32, #tpu.memory_space<vmem>>, vector<1x2x256xf32>
    %134 = vector.shape_cast %133 : vector<1x2x256xf32> to vector<2x256xf32>
    %cst_49 = arith.constant dense<0.000000e+00> : vector<2x256xf32>
    %135 = tpu.matmul %128, %27, %cst_49 {dimension_numbers = #tpu.dot_dimension_numbers<[1], [0], [0], [1], [0, 0, 1, 1], [], []>} : vector<2x64xbf16>, vector<64x256xbf16>, vector<2x256xf32> -> vector<2x256xf32>
    %136 = arith.addf %134, %135 : vector<2x256xf32>
    %137 = math.tanh %136 : vector<2x256xf32>
    %cst_50 = arith.constant 5.000000e-01 : f32
    %138 = vector.broadcast %cst_50 : f32 to vector<2x256xf32>
    %139 = arith.mulf %138, %137 : vector<2x256xf32>
    %cst_51 = arith.constant 5.000000e-01 : f32
    %140 = vector.broadcast %cst_51 : f32 to vector<2x256xf32>
    %141 = arith.addf %139, %140 : vector<2x256xf32>
    %142 = arith.select %5, %137, %141 : vector<2x256xi1>, vector<2x256xf32>
    %143 = vector.extract_strided_slice %142 {offsets = [0, 0], sizes = [2, 64], strides = [1, 1]} : vector<2x256xf32> to vector<2x64xf32>
    %144 = vector.extract_strided_slice %142 {offsets = [0, 64], sizes = [2, 64], strides = [1, 1]} : vector<2x256xf32> to vector<2x64xf32>
    %145 = vector.extract_strided_slice %142 {offsets = [0, 128], sizes = [2, 64], strides = [1, 1]} : vector<2x256xf32> to vector<2x64xf32>
    %146 = vector.extract_strided_slice %142 {offsets = [0, 192], sizes = [2, 64], strides = [1, 1]} : vector<2x256xf32> to vector<2x64xf32>
    %147 = arith.mulf %144, %125 : vector<2x64xf32>
    %148 = arith.mulf %143, %145 : vector<2x64xf32>
    %149 = arith.addf %147, %148 : vector<2x64xf32>
    %150 = math.tanh %149 : vector<2x64xf32>
    %151 = arith.mulf %146, %150 : vector<2x64xf32>
    %152 = arith.truncf %151 : vector<2x64xf32> to vector<2x64xbf16>
    %153 = vector.extract_strided_slice %151 {offsets = [0, 0], sizes = [2, 32], strides = [1, 1]} : vector<2x64xf32> to vector<2x32xf32>
    %c4_52 = arith.constant 4 : index
    %c0_53 = arith.constant 0 : index
    %154 = vector.load %arg13[%c4_52, %c0_53] : memref<16x64xf32, #tpu.memory_space<vmem>>, vector<2x32xf32>
    tpu.vector_store %arg13[%c4_52, %c0_53], %153 {strides = array<i32>} : memref<16x64xf32, #tpu.memory_space<vmem>>, vector<2x32xf32>,
    %155 = vector.extract_strided_slice %151 {offsets = [0, 32], sizes = [2, 32], strides = [1, 1]} : vector<2x64xf32> to vector<2x32xf32>
    %c10 = arith.constant 10 : index
    %c32_54 = arith.constant 32 : index
    %156 = vector.load %arg13[%c10, %c32_54] : memref<16x64xf32, #tpu.memory_space<vmem>>, vector<2x32xf32>
    tpu.vector_store %arg13[%c10, %c32_54], %155 {strides = array<i32>} : memref<16x64xf32, #tpu.memory_space<vmem>>, vector<2x32xf32>,
    %c3_55 = arith.constant 3 : index
    %c0_56 = arith.constant 0 : index
    %c0_57 = arith.constant 0 : index
    %157 = vector.load %arg12[%c3_55, %c0_56, %c0_57] : memref<8x2x256xf32, #tpu.memory_space<vmem>>, vector<1x2x256xf32>
    %158 = vector.shape_cast %157 : vector<1x2x256xf32> to vector<2x256xf32>
    %cst_58 = arith.constant dense<0.000000e+00> : vector<2x256xf32>
    %159 = tpu.matmul %152, %27, %cst_58 {dimension_numbers = #tpu.dot_dimension_numbers<[1], [0], [0], [1], [0, 0, 1, 1], [], []>} : vector<2x64xbf16>, vector<64x256xbf16>, vector<2x256xf32> -> vector<2x256xf32>
    %160 = arith.addf %158, %159 : vector<2x256xf32>
    %161 = math.tanh %160 : vector<2x256xf32>
    %cst_59 = arith.constant 5.000000e-01 : f32
    %162 = vector.broadcast %cst_59 : f32 to vector<2x256xf32>
    %163 = arith.mulf %162, %161 : vector<2x256xf32>
    %cst_60 = arith.constant 5.000000e-01 : f32
    %164 = vector.broadcast %cst_60 : f32 to vector<2x256xf32>
    %165 = arith.addf %163, %164 : vector<2x256xf32>
    %166 = arith.select %5, %161, %165 : vector<2x256xi1>, vector<2x256xf32>
    %167 = vector.extract_strided_slice %166 {offsets = [0, 0], sizes = [2, 64], strides = [1, 1]} : vector<2x256xf32> to vector<2x64xf32>
    %168 = vector.extract_strided_slice %166 {offsets = [0, 64], sizes = [2, 64], strides = [1, 1]} : vector<2x256xf32> to vector<2x64xf32>
    %169 = vector.extract_strided_slice %166 {offsets = [0, 128], sizes = [2, 64], strides = [1, 1]} : vector<2x256xf32> to vector<2x64xf32>
    %170 = vector.extract_strided_slice %166 {offsets = [0, 192], sizes = [2, 64], strides = [1, 1]} : vector<2x256xf32> to vector<2x64xf32>
    %171 = arith.mulf %168, %149 : vector<2x64xf32>
    %172 = arith.mulf %167, %169 : vector<2x64xf32>
    %173 = arith.addf %171, %172 : vector<2x64xf32>
    %174 = math.tanh %173 : vector<2x64xf32>
    %175 = arith.mulf %170, %174 : vector<2x64xf32>
    %176 = arith.truncf %175 : vector<2x64xf32> to vector<2x64xbf16>
    %177 = vector.extract_strided_slice %175 {offsets = [0, 0], sizes = [2, 32], strides = [1, 1]} : vector<2x64xf32> to vector<2x32xf32>
    %c6_61 = arith.constant 6 : index
    %c0_62 = arith.constant 0 : index
    %178 = vector.load %arg13[%c6_61, %c0_62] : memref<16x64xf32, #tpu.memory_space<vmem>>, vector<2x32xf32>
    tpu.vector_store %arg13[%c6_61, %c0_62], %177 {strides = array<i32>} : memref<16x64xf32, #tpu.memory_space<vmem>>, vector<2x32xf32>,
    %179 = vector.extract_strided_slice %175 {offsets = [0, 32], sizes = [2, 32], strides = [1, 1]} : vector<2x64xf32> to vector<2x32xf32>
    %c8 = arith.constant 8 : index
    %c32_63 = arith.constant 32 : index
    %180 = vector.load %arg13[%c8, %c32_63] : memref<16x64xf32, #tpu.memory_space<vmem>>, vector<2x32xf32>
    tpu.vector_store %arg13[%c8, %c32_63], %179 {strides = array<i32>} : memref<16x64xf32, #tpu.memory_space<vmem>>, vector<2x32xf32>,
    %c4_64 = arith.constant 4 : index
    %c0_65 = arith.constant 0 : index
    %c0_66 = arith.constant 0 : index
    %181 = vector.load %arg12[%c4_64, %c0_65, %c0_66] : memref<8x2x256xf32, #tpu.memory_space<vmem>>, vector<1x2x256xf32>
    %182 = vector.shape_cast %181 : vector<1x2x256xf32> to vector<2x256xf32>
    %cst_67 = arith.constant dense<0.000000e+00> : vector<2x256xf32>
    %183 = tpu.matmul %176, %27, %cst_67 {dimension_numbers = #tpu.dot_dimension_numbers<[1], [0], [0], [1], [0, 0, 1, 1], [], []>} : vector<2x64xbf16>, vector<64x256xbf16>, vector<2x256xf32> -> vector<2x256xf32>
    %184 = arith.addf %182, %183 : vector<2x256xf32>
    %185 = math.tanh %184 : vector<2x256xf32>
    %cst_68 = arith.constant 5.000000e-01 : f32
    %186 = vector.broadcast %cst_68 : f32 to vector<2x256xf32>
    %187 = arith.mulf %186, %185 : vector<2x256xf32>
    %cst_69 = arith.constant 5.000000e-01 : f32
    %188 = vector.broadcast %cst_69 : f32 to vector<2x256xf32>
    %189 = arith.addf %187, %188 : vector<2x256xf32>
    %190 = arith.select %5, %185, %189 : vector<2x256xi1>, vector<2x256xf32>
    %191 = vector.extract_strided_slice %190 {offsets = [0, 0], sizes = [2, 64], strides = [1, 1]} : vector<2x256xf32> to vector<2x64xf32>
    %192 = vector.extract_strided_slice %190 {offsets = [0, 64], sizes = [2, 64], strides = [1, 1]} : vector<2x256xf32> to vector<2x64xf32>
    %193 = vector.extract_strided_slice %190 {offsets = [0, 128], sizes = [2, 64], strides = [1, 1]} : vector<2x256xf32> to vector<2x64xf32>
    %194 = vector.extract_strided_slice %190 {offsets = [0, 192], sizes = [2, 64], strides = [1, 1]} : vector<2x256xf32> to vector<2x64xf32>
    %195 = arith.mulf %192, %173 : vector<2x64xf32>
    %196 = arith.mulf %191, %193 : vector<2x64xf32>
    %197 = arith.addf %195, %196 : vector<2x64xf32>
    %198 = math.tanh %197 : vector<2x64xf32>
    %199 = arith.mulf %194, %198 : vector<2x64xf32>
    %200 = arith.truncf %199 : vector<2x64xf32> to vector<2x64xbf16>
    %201 = vector.extract_strided_slice %199 {offsets = [0, 0], sizes = [2, 32], strides = [1, 1]} : vector<2x64xf32> to vector<2x32xf32>
    %c8_70 = arith.constant 8 : index
    %c0_71 = arith.constant 0 : index
    %202 = vector.load %arg13[%c8_70, %c0_71] : memref<16x64xf32, #tpu.memory_space<vmem>>, vector<2x32xf32>
    tpu.vector_store %arg13[%c8_70, %c0_71], %201 {strides = array<i32>} : memref<16x64xf32, #tpu.memory_space<vmem>>, vector<2x32xf32>,
    %203 = vector.extract_strided_slice %199 {offsets = [0, 32], sizes = [2, 32], strides = [1, 1]} : vector<2x64xf32> to vector<2x32xf32>
    %c6_72 = arith.constant 6 : index
    %c32_73 = arith.constant 32 : index
    %204 = vector.load %arg13[%c6_72, %c32_73] : memref<16x64xf32, #tpu.memory_space<vmem>>, vector<2x32xf32>
    tpu.vector_store %arg13[%c6_72, %c32_73], %203 {strides = array<i32>} : memref<16x64xf32, #tpu.memory_space<vmem>>, vector<2x32xf32>,
    %c5_74 = arith.constant 5 : index
    %c0_75 = arith.constant 0 : index
    %c0_76 = arith.constant 0 : index
    %205 = vector.load %arg12[%c5_74, %c0_75, %c0_76] : memref<8x2x256xf32, #tpu.memory_space<vmem>>, vector<1x2x256xf32>
    %206 = vector.shape_cast %205 : vector<1x2x256xf32> to vector<2x256xf32>
    %cst_77 = arith.constant dense<0.000000e+00> : vector<2x256xf32>
    %207 = tpu.matmul %200, %27, %cst_77 {dimension_numbers = #tpu.dot_dimension_numbers<[1], [0], [0], [1], [0, 0, 1, 1], [], []>} : vector<2x64xbf16>, vector<64x256xbf16>, vector<2x256xf32> -> vector<2x256xf32>
    %208 = arith.addf %206, %207 : vector<2x256xf32>
    %209 = math.tanh %208 : vector<2x256xf32>
    %cst_78 = arith.constant 5.000000e-01 : f32
    %210 = vector.broadcast %cst_78 : f32 to vector<2x256xf32>
    %211 = arith.mulf %210, %209 : vector<2x256xf32>
    %cst_79 = arith.constant 5.000000e-01 : f32
    %212 = vector.broadcast %cst_79 : f32 to vector<2x256xf32>
    %213 = arith.addf %211, %212 : vector<2x256xf32>
    %214 = arith.select %5, %209, %213 : vector<2x256xi1>, vector<2x256xf32>
    %215 = vector.extract_strided_slice %214 {offsets = [0, 0], sizes = [2, 64], strides = [1, 1]} : vector<2x256xf32> to vector<2x64xf32>
    %216 = vector.extract_strided_slice %214 {offsets = [0, 64], sizes = [2, 64], strides = [1, 1]} : vector<2x256xf32> to vector<2x64xf32>
    %217 = vector.extract_strided_slice %214 {offsets = [0, 128], sizes = [2, 64], strides = [1, 1]} : vector<2x256xf32> to vector<2x64xf32>
    %218 = vector.extract_strided_slice %214 {offsets = [0, 192], sizes = [2, 64], strides = [1, 1]} : vector<2x256xf32> to vector<2x64xf32>
    %219 = arith.mulf %216, %197 : vector<2x64xf32>
    %220 = arith.mulf %215, %217 : vector<2x64xf32>
    %221 = arith.addf %219, %220 : vector<2x64xf32>
    %222 = math.tanh %221 : vector<2x64xf32>
    %223 = arith.mulf %218, %222 : vector<2x64xf32>
    %224 = arith.truncf %223 : vector<2x64xf32> to vector<2x64xbf16>
    %225 = vector.extract_strided_slice %223 {offsets = [0, 0], sizes = [2, 32], strides = [1, 1]} : vector<2x64xf32> to vector<2x32xf32>
    %c10_80 = arith.constant 10 : index
    %c0_81 = arith.constant 0 : index
    %226 = vector.load %arg13[%c10_80, %c0_81] : memref<16x64xf32, #tpu.memory_space<vmem>>, vector<2x32xf32>
    tpu.vector_store %arg13[%c10_80, %c0_81], %225 {strides = array<i32>} : memref<16x64xf32, #tpu.memory_space<vmem>>, vector<2x32xf32>,
    %227 = vector.extract_strided_slice %223 {offsets = [0, 32], sizes = [2, 32], strides = [1, 1]} : vector<2x64xf32> to vector<2x32xf32>
    %c4_82 = arith.constant 4 : index
    %c32_83 = arith.constant 32 : index
    %228 = vector.load %arg13[%c4_82, %c32_83] : memref<16x64xf32, #tpu.memory_space<vmem>>, vector<2x32xf32>
    tpu.vector_store %arg13[%c4_82, %c32_83], %227 {strides = array<i32>} : memref<16x64xf32, #tpu.memory_space<vmem>>, vector<2x32xf32>,
    %c6_84 = arith.constant 6 : index
    %c0_85 = arith.constant 0 : index
    %c0_86 = arith.constant 0 : index
    %229 = vector.load %arg12[%c6_84, %c0_85, %c0_86] : memref<8x2x256xf32, #tpu.memory_space<vmem>>, vector<1x2x256xf32>
    %230 = vector.shape_cast %229 : vector<1x2x256xf32> to vector<2x256xf32>
    %cst_87 = arith.constant dense<0.000000e+00> : vector<2x256xf32>
    %231 = tpu.matmul %224, %27, %cst_87 {dimension_numbers = #tpu.dot_dimension_numbers<[1], [0], [0], [1], [0, 0, 1, 1], [], []>} : vector<2x64xbf16>, vector<64x256xbf16>, vector<2x256xf32> -> vector<2x256xf32>
    %232 = arith.addf %230, %231 : vector<2x256xf32>
    %233 = math.tanh %232 : vector<2x256xf32>
    %cst_88 = arith.constant 5.000000e-01 : f32
    %234 = vector.broadcast %cst_88 : f32 to vector<2x256xf32>
    %235 = arith.mulf %234, %233 : vector<2x256xf32>
    %cst_89 = arith.constant 5.000000e-01 : f32
    %236 = vector.broadcast %cst_89 : f32 to vector<2x256xf32>
    %237 = arith.addf %235, %236 : vector<2x256xf32>
    %238 = arith.select %5, %233, %237 : vector<2x256xi1>, vector<2x256xf32>
    %239 = vector.extract_strided_slice %238 {offsets = [0, 0], sizes = [2, 64], strides = [1, 1]} : vector<2x256xf32> to vector<2x64xf32>
    %240 = vector.extract_strided_slice %238 {offsets = [0, 64], sizes = [2, 64], strides = [1, 1]} : vector<2x256xf32> to vector<2x64xf32>
    %241 = vector.extract_strided_slice %238 {offsets = [0, 128], sizes = [2, 64], strides = [1, 1]} : vector<2x256xf32> to vector<2x64xf32>
    %242 = vector.extract_strided_slice %238 {offsets = [0, 192], sizes = [2, 64], strides = [1, 1]} : vector<2x256xf32> to vector<2x64xf32>
    %243 = arith.mulf %240, %221 : vector<2x64xf32>
    %244 = arith.mulf %239, %241 : vector<2x64xf32>
    %245 = arith.addf %243, %244 : vector<2x64xf32>
    %246 = math.tanh %245 : vector<2x64xf32>
    %247 = arith.mulf %242, %246 : vector<2x64xf32>
    %248 = arith.truncf %247 : vector<2x64xf32> to vector<2x64xbf16>
    %249 = vector.extract_strided_slice %247 {offsets = [0, 0], sizes = [2, 32], strides = [1, 1]} : vector<2x64xf32> to vector<2x32xf32>
    %c12_90 = arith.constant 12 : index
    %c0_91 = arith.constant 0 : index
    %250 = vector.load %arg13[%c12_90, %c0_91] : memref<16x64xf32, #tpu.memory_space<vmem>>, vector<2x32xf32>
    tpu.vector_store %arg13[%c12_90, %c0_91], %249 {strides = array<i32>} : memref<16x64xf32, #tpu.memory_space<vmem>>, vector<2x32xf32>,
    %251 = vector.extract_strided_slice %247 {offsets = [0, 32], sizes = [2, 32], strides = [1, 1]} : vector<2x64xf32> to vector<2x32xf32>
    %c2_92 = arith.constant 2 : index
    %c32_93 = arith.constant 32 : index
    %252 = vector.load %arg13[%c2_92, %c32_93] : memref<16x64xf32, #tpu.memory_space<vmem>>, vector<2x32xf32>
    tpu.vector_store %arg13[%c2_92, %c32_93], %251 {strides = array<i32>} : memref<16x64xf32, #tpu.memory_space<vmem>>, vector<2x32xf32>,
    %c7_94 = arith.constant 7 : index
    %c0_95 = arith.constant 0 : index
    %c0_96 = arith.constant 0 : index
    %253 = vector.load %arg12[%c7_94, %c0_95, %c0_96] : memref<8x2x256xf32, #tpu.memory_space<vmem>>, vector<1x2x256xf32>
    %254 = vector.shape_cast %253 : vector<1x2x256xf32> to vector<2x256xf32>
    %cst_97 = arith.constant dense<0.000000e+00> : vector<2x256xf32>
    %255 = tpu.matmul %248, %27, %cst_97 {dimension_numbers = #tpu.dot_dimension_numbers<[1], [0], [0], [1], [0, 0, 1, 1], [], []>} : vector<2x64xbf16>, vector<64x256xbf16>, vector<2x256xf32> -> vector<2x256xf32>
    %256 = arith.addf %254, %255 : vector<2x256xf32>
    %257 = math.tanh %256 : vector<2x256xf32>
    %cst_98 = arith.constant 5.000000e-01 : f32
    %258 = vector.broadcast %cst_98 : f32 to vector<2x256xf32>
    %259 = arith.mulf %258, %257 : vector<2x256xf32>
    %cst_99 = arith.constant 5.000000e-01 : f32
    %260 = vector.broadcast %cst_99 : f32 to vector<2x256xf32>
    %261 = arith.addf %259, %260 : vector<2x256xf32>
    %262 = arith.select %5, %257, %261 : vector<2x256xi1>, vector<2x256xf32>
    %263 = vector.extract_strided_slice %262 {offsets = [0, 0], sizes = [2, 64], strides = [1, 1]} : vector<2x256xf32> to vector<2x64xf32>
    %264 = vector.extract_strided_slice %262 {offsets = [0, 64], sizes = [2, 64], strides = [1, 1]} : vector<2x256xf32> to vector<2x64xf32>
    %265 = vector.extract_strided_slice %262 {offsets = [0, 128], sizes = [2, 64], strides = [1, 1]} : vector<2x256xf32> to vector<2x64xf32>
    %266 = vector.extract_strided_slice %262 {offsets = [0, 192], sizes = [2, 64], strides = [1, 1]} : vector<2x256xf32> to vector<2x64xf32>
    %267 = arith.mulf %264, %245 : vector<2x64xf32>
    %268 = arith.mulf %263, %265 : vector<2x64xf32>
    %269 = arith.addf %267, %268 : vector<2x64xf32>
    %270 = math.tanh %269 : vector<2x64xf32>
    %271 = arith.mulf %266, %270 : vector<2x64xf32>
    %272 = vector.extract_strided_slice %271 {offsets = [0, 0], sizes = [2, 32], strides = [1, 1]} : vector<2x64xf32> to vector<2x32xf32>
    %c14_100 = arith.constant 14 : index
    %c0_101 = arith.constant 0 : index
    %273 = vector.load %arg13[%c14_100, %c0_101] : memref<16x64xf32, #tpu.memory_space<vmem>>, vector<2x32xf32>
    tpu.vector_store %arg13[%c14_100, %c0_101], %272 {strides = array<i32>} : memref<16x64xf32, #tpu.memory_space<vmem>>, vector<2x32xf32>,
    %274 = vector.extract_strided_slice %271 {offsets = [0, 32], sizes = [2, 32], strides = [1, 1]} : vector<2x64xf32> to vector<2x32xf32>
    %c0_102 = arith.constant 0 : index
    %c32_103 = arith.constant 32 : index
    %275 = vector.load %arg13[%c0_102, %c32_103] : memref<16x64xf32, #tpu.memory_space<vmem>>, vector<2x32xf32>
    tpu.vector_store %arg13[%c0_102, %c32_103], %274 {strides = array<i32>} : memref<16x64xf32, #tpu.memory_space<vmem>>, vector<2x32xf32>,
    %c0_104 = arith.constant 0 : index
    %c0_105 = arith.constant 0 : index
    %276 = vector.load %arg6[%c0_104, %c0_105] : memref<64x256xbf16, #tpu.memory_space<vmem>>, vector<64x256xbf16>
    %c0_106 = arith.constant 0 : index
    %c0_107 = arith.constant 0 : index
    %277 = vector.load %arg13[%c0_106, %c0_107] : memref<16x64xf32, #tpu.memory_space<vmem>>, vector<16x64xf32>
    %278 = arith.truncf %277 : vector<16x64xf32> to vector<16x64xbf16>
    %c0_108 = arith.constant 0 : index
    %c0_109 = arith.constant 0 : index
    %279 = vector.load %arg4[%c0_108, %c0_109] : memref<64x256xbf16, #tpu.memory_space<vmem>>, vector<64x256xbf16>
    %cst_110 = arith.constant dense<0.000000e+00> : vector<16x256xf32>
    %280 = tpu.matmul %278, %279, %cst_110 {dimension_numbers = #tpu.dot_dimension_numbers<[1], [0], [0], [1], [0, 0, 1, 1], [], []>} : vector<16x64xbf16>, vector<64x256xbf16>, vector<16x256xf32> -> vector<16x256xf32>
    %c0_111 = arith.constant 0 : index
    %c0_112 = arith.constant 0 : index
    %281 = vector.load %arg5[%c0_111, %c0_112] : memref<1x256xf32, #tpu.memory_space<vmem>>, vector<1x256xf32>
    %282 = vector.broadcast %281 : vector<1x256xf32> to vector<16x256xf32>
    %283 = arith.addf %280, %282 : vector<16x256xf32>
    %284 = vector.extract_strided_slice %283 {offsets = [14, 0], sizes = [2, 256], strides = [1, 1]} : vector<16x256xf32> to vector<2x256xf32>
    %285 = vector.extract_strided_slice %283 {offsets = [0, 0], sizes = [2, 256], strides = [1, 1]} : vector<16x256xf32> to vector<2x256xf32>
    %286 = arith.select %25, %284, %285 : vector<2x256xi1>, vector<2x256xf32>
    %c0_113 = arith.constant 0 : index
    %c0_114 = arith.constant 0 : index
    %c0_115 = arith.constant 0 : index
    %287 = vector.load %arg12[%c0_113, %c0_114, %c0_115] : memref<8x2x256xf32, #tpu.memory_space<vmem>>, vector<1x2x256xf32>
    %288 = vector.shape_cast %287 : vector<1x2x256xf32> to vector<2x256xf32>
    %289 = vector.shape_cast %286 : vector<2x256xf32> to vector<1x2x256xf32>
    tpu.vector_store %arg12[%c0_113, %c0_114, %c0_115], %289 {strides = array<i32>} : memref<8x2x256xf32, #tpu.memory_space<vmem>>, vector<1x2x256xf32>,
    %290 = vector.extract_strided_slice %283 {offsets = [12, 0], sizes = [2, 256], strides = [1, 1]} : vector<16x256xf32> to vector<2x256xf32>
    %291 = vector.extract_strided_slice %283 {offsets = [2, 0], sizes = [2, 256], strides = [1, 1]} : vector<16x256xf32> to vector<2x256xf32>
    %292 = arith.select %25, %290, %291 : vector<2x256xi1>, vector<2x256xf32>
    %c1_116 = arith.constant 1 : index
    %c0_117 = arith.constant 0 : index
    %c0_118 = arith.constant 0 : index
    %293 = vector.load %arg12[%c1_116, %c0_117, %c0_118] : memref<8x2x256xf32, #tpu.memory_space<vmem>>, vector<1x2x256xf32>
    %294 = vector.shape_cast %293 : vector<1x2x256xf32> to vector<2x256xf32>
    %295 = vector.shape_cast %292 : vector<2x256xf32> to vector<1x2x256xf32>
    tpu.vector_store %arg12[%c1_116, %c0_117, %c0_118], %295 {strides = array<i32>} : memref<8x2x256xf32, #tpu.memory_space<vmem>>, vector<1x2x256xf32>,
    %296 = vector.extract_strided_slice %283 {offsets = [10, 0], sizes = [2, 256], strides = [1, 1]} : vector<16x256xf32> to vector<2x256xf32>
    %297 = vector.extract_strided_slice %283 {offsets = [4, 0], sizes = [2, 256], strides = [1, 1]} : vector<16x256xf32> to vector<2x256xf32>
    %298 = arith.select %25, %296, %297 : vector<2x256xi1>, vector<2x256xf32>
    %c2_119 = arith.constant 2 : index
    %c0_120 = arith.constant 0 : index
    %c0_121 = arith.constant 0 : index
    %299 = vector.load %arg12[%c2_119, %c0_120, %c0_121] : memref<8x2x256xf32, #tpu.memory_space<vmem>>, vector<1x2x256xf32>
    %300 = vector.shape_cast %299 : vector<1x2x256xf32> to vector<2x256xf32>
    %301 = vector.shape_cast %298 : vector<2x256xf32> to vector<1x2x256xf32>
    tpu.vector_store %arg12[%c2_119, %c0_120, %c0_121], %301 {strides = array<i32>} : memref<8x2x256xf32, #tpu.memory_space<vmem>>, vector<1x2x256xf32>,
    %302 = vector.extract_strided_slice %283 {offsets = [8, 0], sizes = [2, 256], strides = [1, 1]} : vector<16x256xf32> to vector<2x256xf32>
    %303 = vector.extract_strided_slice %283 {offsets = [6, 0], sizes = [2, 256], strides = [1, 1]} : vector<16x256xf32> to vector<2x256xf32>
    %304 = arith.select %25, %302, %303 : vector<2x256xi1>, vector<2x256xf32>
    %c3_122 = arith.constant 3 : index
    %c0_123 = arith.constant 0 : index
    %c0_124 = arith.constant 0 : index
    %305 = vector.load %arg12[%c3_122, %c0_123, %c0_124] : memref<8x2x256xf32, #tpu.memory_space<vmem>>, vector<1x2x256xf32>
    %306 = vector.shape_cast %305 : vector<1x2x256xf32> to vector<2x256xf32>
    %307 = vector.shape_cast %304 : vector<2x256xf32> to vector<1x2x256xf32>
    tpu.vector_store %arg12[%c3_122, %c0_123, %c0_124], %307 {strides = array<i32>} : memref<8x2x256xf32, #tpu.memory_space<vmem>>, vector<1x2x256xf32>,
    %308 = vector.extract_strided_slice %283 {offsets = [6, 0], sizes = [2, 256], strides = [1, 1]} : vector<16x256xf32> to vector<2x256xf32>
    %309 = vector.extract_strided_slice %283 {offsets = [8, 0], sizes = [2, 256], strides = [1, 1]} : vector<16x256xf32> to vector<2x256xf32>
    %310 = arith.select %25, %308, %309 : vector<2x256xi1>, vector<2x256xf32>
    %c4_125 = arith.constant 4 : index
    %c0_126 = arith.constant 0 : index
    %c0_127 = arith.constant 0 : index
    %311 = vector.load %arg12[%c4_125, %c0_126, %c0_127] : memref<8x2x256xf32, #tpu.memory_space<vmem>>, vector<1x2x256xf32>
    %312 = vector.shape_cast %311 : vector<1x2x256xf32> to vector<2x256xf32>
    %313 = vector.shape_cast %310 : vector<2x256xf32> to vector<1x2x256xf32>
    tpu.vector_store %arg12[%c4_125, %c0_126, %c0_127], %313 {strides = array<i32>} : memref<8x2x256xf32, #tpu.memory_space<vmem>>, vector<1x2x256xf32>,
    %314 = vector.extract_strided_slice %283 {offsets = [4, 0], sizes = [2, 256], strides = [1, 1]} : vector<16x256xf32> to vector<2x256xf32>
    %315 = vector.extract_strided_slice %283 {offsets = [10, 0], sizes = [2, 256], strides = [1, 1]} : vector<16x256xf32> to vector<2x256xf32>
    %316 = arith.select %25, %314, %315 : vector<2x256xi1>, vector<2x256xf32>
    %c5_128 = arith.constant 5 : index
    %c0_129 = arith.constant 0 : index
    %c0_130 = arith.constant 0 : index
    %317 = vector.load %arg12[%c5_128, %c0_129, %c0_130] : memref<8x2x256xf32, #tpu.memory_space<vmem>>, vector<1x2x256xf32>
    %318 = vector.shape_cast %317 : vector<1x2x256xf32> to vector<2x256xf32>
    %319 = vector.shape_cast %316 : vector<2x256xf32> to vector<1x2x256xf32>
    tpu.vector_store %arg12[%c5_128, %c0_129, %c0_130], %319 {strides = array<i32>} : memref<8x2x256xf32, #tpu.memory_space<vmem>>, vector<1x2x256xf32>,
    %320 = vector.extract_strided_slice %283 {offsets = [2, 0], sizes = [2, 256], strides = [1, 1]} : vector<16x256xf32> to vector<2x256xf32>
    %321 = vector.extract_strided_slice %283 {offsets = [12, 0], sizes = [2, 256], strides = [1, 1]} : vector<16x256xf32> to vector<2x256xf32>
    %322 = arith.select %25, %320, %321 : vector<2x256xi1>, vector<2x256xf32>
    %c6_131 = arith.constant 6 : index
    %c0_132 = arith.constant 0 : index
    %c0_133 = arith.constant 0 : index
    %323 = vector.load %arg12[%c6_131, %c0_132, %c0_133] : memref<8x2x256xf32, #tpu.memory_space<vmem>>, vector<1x2x256xf32>
    %324 = vector.shape_cast %323 : vector<1x2x256xf32> to vector<2x256xf32>
    %325 = vector.shape_cast %322 : vector<2x256xf32> to vector<1x2x256xf32>
    tpu.vector_store %arg12[%c6_131, %c0_132, %c0_133], %325 {strides = array<i32>} : memref<8x2x256xf32, #tpu.memory_space<vmem>>, vector<1x2x256xf32>,
    %326 = vector.extract_strided_slice %283 {offsets = [0, 0], sizes = [2, 256], strides = [1, 1]} : vector<16x256xf32> to vector<2x256xf32>
    %327 = vector.extract_strided_slice %283 {offsets = [14, 0], sizes = [2, 256], strides = [1, 1]} : vector<16x256xf32> to vector<2x256xf32>
    %328 = arith.select %25, %326, %327 : vector<2x256xi1>, vector<2x256xf32>
    %c7_134 = arith.constant 7 : index
    %c0_135 = arith.constant 0 : index
    %c0_136 = arith.constant 0 : index
    %329 = vector.load %arg12[%c7_134, %c0_135, %c0_136] : memref<8x2x256xf32, #tpu.memory_space<vmem>>, vector<1x2x256xf32>
    %330 = vector.shape_cast %329 : vector<1x2x256xf32> to vector<2x256xf32>
    %331 = vector.shape_cast %328 : vector<2x256xf32> to vector<1x2x256xf32>
    tpu.vector_store %arg12[%c7_134, %c0_135, %c0_136], %331 {strides = array<i32>} : memref<8x2x256xf32, #tpu.memory_space<vmem>>, vector<1x2x256xf32>,
    %cst_137 = arith.constant 0.000000e+00 : f32
    %332 = vector.broadcast %cst_137 : f32 to vector<2x64xf32>
    %cst_138 = arith.constant 0.000000e+00 : f32
    %333 = vector.broadcast %cst_138 : f32 to vector<2x64xf32>
    %334 = arith.truncf %332 : vector<2x64xf32> to vector<2x64xbf16>
    %c0_139 = arith.constant 0 : index
    %c0_140 = arith.constant 0 : index
    %c0_141 = arith.constant 0 : index
    %335 = vector.load %arg12[%c0_139, %c0_140, %c0_141] : memref<8x2x256xf32, #tpu.memory_space<vmem>>, vector<1x2x256xf32>
    %336 = vector.shape_cast %335 : vector<1x2x256xf32> to vector<2x256xf32>
    %cst_142 = arith.constant dense<0.000000e+00> : vector<2x256xf32>
    %337 = tpu.matmul %334, %276, %cst_142 {dimension_numbers = #tpu.dot_dimension_numbers<[1], [0], [0], [1], [0, 0, 1, 1], [], []>} : vector<2x64xbf16>, vector<64x256xbf16>, vector<2x256xf32> -> vector<2x256xf32>
    %338 = arith.addf %336, %337 : vector<2x256xf32>
    %339 = math.tanh %338 : vector<2x256xf32>
    %cst_143 = arith.constant 5.000000e-01 : f32
    %340 = vector.broadcast %cst_143 : f32 to vector<2x256xf32>
    %341 = arith.mulf %340, %339 : vector<2x256xf32>
    %cst_144 = arith.constant 5.000000e-01 : f32
    %342 = vector.broadcast %cst_144 : f32 to vector<2x256xf32>
    %343 = arith.addf %341, %342 : vector<2x256xf32>
    %344 = arith.select %5, %339, %343 : vector<2x256xi1>, vector<2x256xf32>
    %345 = vector.extract_strided_slice %344 {offsets = [0, 0], sizes = [2, 64], strides = [1, 1]} : vector<2x256xf32> to vector<2x64xf32>
    %346 = vector.extract_strided_slice %344 {offsets = [0, 64], sizes = [2, 64], strides = [1, 1]} : vector<2x256xf32> to vector<2x64xf32>
    %347 = vector.extract_strided_slice %344 {offsets = [0, 128], sizes = [2, 64], strides = [1, 1]} : vector<2x256xf32> to vector<2x64xf32>
    %348 = vector.extract_strided_slice %344 {offsets = [0, 192], sizes = [2, 64], strides = [1, 1]} : vector<2x256xf32> to vector<2x64xf32>
    %349 = arith.mulf %346, %333 : vector<2x64xf32>
    %350 = arith.mulf %345, %347 : vector<2x64xf32>
    %351 = arith.addf %349, %350 : vector<2x64xf32>
    %352 = math.tanh %351 : vector<2x64xf32>
    %353 = arith.mulf %348, %352 : vector<2x64xf32>
    %354 = arith.truncf %353 : vector<2x64xf32> to vector<2x64xbf16>
    %c0_145 = arith.constant 0 : index
    %c0_146 = arith.constant 0 : index
    %355 = vector.load %arg7[%c0_145, %c0_146] : memref<512x128xbf16, #tpu.memory_space<vmem>>, vector<64x128xbf16>
    %cst_147 = arith.constant dense<0.000000e+00> : vector<2x128xf32>
    %356 = tpu.matmul %354, %355, %cst_147 {dimension_numbers = #tpu.dot_dimension_numbers<[1], [0], [0], [1], [0, 0, 1, 1], [], []>} : vector<2x64xbf16>, vector<64x128xbf16>, vector<2x128xf32> -> vector<2x128xf32>
    %357 = arith.addf %26, %356 : vector<2x128xf32>
    %c1_148 = arith.constant 1 : index
    %c0_149 = arith.constant 0 : index
    %c0_150 = arith.constant 0 : index
    %358 = vector.load %arg12[%c1_148, %c0_149, %c0_150] : memref<8x2x256xf32, #tpu.memory_space<vmem>>, vector<1x2x256xf32>
    %359 = vector.shape_cast %358 : vector<1x2x256xf32> to vector<2x256xf32>
    %cst_151 = arith.constant dense<0.000000e+00> : vector<2x256xf32>
    %360 = tpu.matmul %354, %276, %cst_151 {dimension_numbers = #tpu.dot_dimension_numbers<[1], [0], [0], [1], [0, 0, 1, 1], [], []>} : vector<2x64xbf16>, vector<64x256xbf16>, vector<2x256xf32> -> vector<2x256xf32>
    %361 = arith.addf %359, %360 : vector<2x256xf32>
    %362 = math.tanh %361 : vector<2x256xf32>
    %cst_152 = arith.constant 5.000000e-01 : f32
    %363 = vector.broadcast %cst_152 : f32 to vector<2x256xf32>
    %364 = arith.mulf %363, %362 : vector<2x256xf32>
    %cst_153 = arith.constant 5.000000e-01 : f32
    %365 = vector.broadcast %cst_153 : f32 to vector<2x256xf32>
    %366 = arith.addf %364, %365 : vector<2x256xf32>
    %367 = arith.select %5, %362, %366 : vector<2x256xi1>, vector<2x256xf32>
    %368 = vector.extract_strided_slice %367 {offsets = [0, 0], sizes = [2, 64], strides = [1, 1]} : vector<2x256xf32> to vector<2x64xf32>
    %369 = vector.extract_strided_slice %367 {offsets = [0, 64], sizes = [2, 64], strides = [1, 1]} : vector<2x256xf32> to vector<2x64xf32>
    %370 = vector.extract_strided_slice %367 {offsets = [0, 128], sizes = [2, 64], strides = [1, 1]} : vector<2x256xf32> to vector<2x64xf32>
    %371 = vector.extract_strided_slice %367 {offsets = [0, 192], sizes = [2, 64], strides = [1, 1]} : vector<2x256xf32> to vector<2x64xf32>
    %372 = arith.mulf %369, %351 : vector<2x64xf32>
    %373 = arith.mulf %368, %370 : vector<2x64xf32>
    %374 = arith.addf %372, %373 : vector<2x64xf32>
    %375 = math.tanh %374 : vector<2x64xf32>
    %376 = arith.mulf %371, %375 : vector<2x64xf32>
    %377 = arith.truncf %376 : vector<2x64xf32> to vector<2x64xbf16>
    %c64 = arith.constant 64 : index
    %c0_154 = arith.constant 0 : index
    %378 = vector.load %arg7[%c64, %c0_154] : memref<512x128xbf16, #tpu.memory_space<vmem>>, vector<64x128xbf16>
    %cst_155 = arith.constant dense<0.000000e+00> : vector<2x128xf32>
    %379 = tpu.matmul %377, %378, %cst_155 {dimension_numbers = #tpu.dot_dimension_numbers<[1], [0], [0], [1], [0, 0, 1, 1], [], []>} : vector<2x64xbf16>, vector<64x128xbf16>, vector<2x128xf32> -> vector<2x128xf32>
    %380 = arith.addf %357, %379 : vector<2x128xf32>
    %c2_156 = arith.constant 2 : index
    %c0_157 = arith.constant 0 : index
    %c0_158 = arith.constant 0 : index
    %381 = vector.load %arg12[%c2_156, %c0_157, %c0_158] : memref<8x2x256xf32, #tpu.memory_space<vmem>>, vector<1x2x256xf32>
    %382 = vector.shape_cast %381 : vector<1x2x256xf32> to vector<2x256xf32>
    %cst_159 = arith.constant dense<0.000000e+00> : vector<2x256xf32>
    %383 = tpu.matmul %377, %276, %cst_159 {dimension_numbers = #tpu.dot_dimension_numbers<[1], [0], [0], [1], [0, 0, 1, 1], [], []>} : vector<2x64xbf16>, vector<64x256xbf16>, vector<2x256xf32> -> vector<2x256xf32>
    %384 = arith.addf %382, %383 : vector<2x256xf32>
    %385 = math.tanh %384 : vector<2x256xf32>
    %cst_160 = arith.constant 5.000000e-01 : f32
    %386 = vector.broadcast %cst_160 : f32 to vector<2x256xf32>
    %387 = arith.mulf %386, %385 : vector<2x256xf32>
    %cst_161 = arith.constant 5.000000e-01 : f32
    %388 = vector.broadcast %cst_161 : f32 to vector<2x256xf32>
    %389 = arith.addf %387, %388 : vector<2x256xf32>
    %390 = arith.select %5, %385, %389 : vector<2x256xi1>, vector<2x256xf32>
    %391 = vector.extract_strided_slice %390 {offsets = [0, 0], sizes = [2, 64], strides = [1, 1]} : vector<2x256xf32> to vector<2x64xf32>
    %392 = vector.extract_strided_slice %390 {offsets = [0, 64], sizes = [2, 64], strides = [1, 1]} : vector<2x256xf32> to vector<2x64xf32>
    %393 = vector.extract_strided_slice %390 {offsets = [0, 128], sizes = [2, 64], strides = [1, 1]} : vector<2x256xf32> to vector<2x64xf32>
    %394 = vector.extract_strided_slice %390 {offsets = [0, 192], sizes = [2, 64], strides = [1, 1]} : vector<2x256xf32> to vector<2x64xf32>
    %395 = arith.mulf %392, %374 : vector<2x64xf32>
    %396 = arith.mulf %391, %393 : vector<2x64xf32>
    %397 = arith.addf %395, %396 : vector<2x64xf32>
    %398 = math.tanh %397 : vector<2x64xf32>
    %399 = arith.mulf %394, %398 : vector<2x64xf32>
    %400 = arith.truncf %399 : vector<2x64xf32> to vector<2x64xbf16>
    %c128 = arith.constant 128 : index
    %c0_162 = arith.constant 0 : index
    %401 = vector.load %arg7[%c128, %c0_162] : memref<512x128xbf16, #tpu.memory_space<vmem>>, vector<64x128xbf16>
    %cst_163 = arith.constant dense<0.000000e+00> : vector<2x128xf32>
    %402 = tpu.matmul %400, %401, %cst_163 {dimension_numbers = #tpu.dot_dimension_numbers<[1], [0], [0], [1], [0, 0, 1, 1], [], []>} : vector<2x64xbf16>, vector<64x128xbf16>, vector<2x128xf32> -> vector<2x128xf32>
    %403 = arith.addf %380, %402 : vector<2x128xf32>
    %c3_164 = arith.constant 3 : index
    %c0_165 = arith.constant 0 : index
    %c0_166 = arith.constant 0 : index
    %404 = vector.load %arg12[%c3_164, %c0_165, %c0_166] : memref<8x2x256xf32, #tpu.memory_space<vmem>>, vector<1x2x256xf32>
    %405 = vector.shape_cast %404 : vector<1x2x256xf32> to vector<2x256xf32>
    %cst_167 = arith.constant dense<0.000000e+00> : vector<2x256xf32>
    %406 = tpu.matmul %400, %276, %cst_167 {dimension_numbers = #tpu.dot_dimension_numbers<[1], [0], [0], [1], [0, 0, 1, 1], [], []>} : vector<2x64xbf16>, vector<64x256xbf16>, vector<2x256xf32> -> vector<2x256xf32>
    %407 = arith.addf %405, %406 : vector<2x256xf32>
    %408 = math.tanh %407 : vector<2x256xf32>
    %cst_168 = arith.constant 5.000000e-01 : f32
    %409 = vector.broadcast %cst_168 : f32 to vector<2x256xf32>
    %410 = arith.mulf %409, %408 : vector<2x256xf32>
    %cst_169 = arith.constant 5.000000e-01 : f32
    %411 = vector.broadcast %cst_169 : f32 to vector<2x256xf32>
    %412 = arith.addf %410, %411 : vector<2x256xf32>
    %413 = arith.select %5, %408, %412 : vector<2x256xi1>, vector<2x256xf32>
    %414 = vector.extract_strided_slice %413 {offsets = [0, 0], sizes = [2, 64], strides = [1, 1]} : vector<2x256xf32> to vector<2x64xf32>
    %415 = vector.extract_strided_slice %413 {offsets = [0, 64], sizes = [2, 64], strides = [1, 1]} : vector<2x256xf32> to vector<2x64xf32>
    %416 = vector.extract_strided_slice %413 {offsets = [0, 128], sizes = [2, 64], strides = [1, 1]} : vector<2x256xf32> to vector<2x64xf32>
    %417 = vector.extract_strided_slice %413 {offsets = [0, 192], sizes = [2, 64], strides = [1, 1]} : vector<2x256xf32> to vector<2x64xf32>
    %418 = arith.mulf %415, %397 : vector<2x64xf32>
    %419 = arith.mulf %414, %416 : vector<2x64xf32>
    %420 = arith.addf %418, %419 : vector<2x64xf32>
    %421 = math.tanh %420 : vector<2x64xf32>
    %422 = arith.mulf %417, %421 : vector<2x64xf32>
    %423 = arith.truncf %422 : vector<2x64xf32> to vector<2x64xbf16>
    %c192 = arith.constant 192 : index
    %c0_170 = arith.constant 0 : index
    %424 = vector.load %arg7[%c192, %c0_170] : memref<512x128xbf16, #tpu.memory_space<vmem>>, vector<64x128xbf16>
    %cst_171 = arith.constant dense<0.000000e+00> : vector<2x128xf32>
    %425 = tpu.matmul %423, %424, %cst_171 {dimension_numbers = #tpu.dot_dimension_numbers<[1], [0], [0], [1], [0, 0, 1, 1], [], []>} : vector<2x64xbf16>, vector<64x128xbf16>, vector<2x128xf32> -> vector<2x128xf32>
    %426 = arith.addf %403, %425 : vector<2x128xf32>
    %c4_172 = arith.constant 4 : index
    %c0_173 = arith.constant 0 : index
    %c0_174 = arith.constant 0 : index
    %427 = vector.load %arg12[%c4_172, %c0_173, %c0_174] : memref<8x2x256xf32, #tpu.memory_space<vmem>>, vector<1x2x256xf32>
    %428 = vector.shape_cast %427 : vector<1x2x256xf32> to vector<2x256xf32>
    %cst_175 = arith.constant dense<0.000000e+00> : vector<2x256xf32>
    %429 = tpu.matmul %423, %276, %cst_175 {dimension_numbers = #tpu.dot_dimension_numbers<[1], [0], [0], [1], [0, 0, 1, 1], [], []>} : vector<2x64xbf16>, vector<64x256xbf16>, vector<2x256xf32> -> vector<2x256xf32>
    %430 = arith.addf %428, %429 : vector<2x256xf32>
    %431 = math.tanh %430 : vector<2x256xf32>
    %cst_176 = arith.constant 5.000000e-01 : f32
    %432 = vector.broadcast %cst_176 : f32 to vector<2x256xf32>
    %433 = arith.mulf %432, %431 : vector<2x256xf32>
    %cst_177 = arith.constant 5.000000e-01 : f32
    %434 = vector.broadcast %cst_177 : f32 to vector<2x256xf32>
    %435 = arith.addf %433, %434 : vector<2x256xf32>
    %436 = arith.select %5, %431, %435 : vector<2x256xi1>, vector<2x256xf32>
    %437 = vector.extract_strided_slice %436 {offsets = [0, 0], sizes = [2, 64], strides = [1, 1]} : vector<2x256xf32> to vector<2x64xf32>
    %438 = vector.extract_strided_slice %436 {offsets = [0, 64], sizes = [2, 64], strides = [1, 1]} : vector<2x256xf32> to vector<2x64xf32>
    %439 = vector.extract_strided_slice %436 {offsets = [0, 128], sizes = [2, 64], strides = [1, 1]} : vector<2x256xf32> to vector<2x64xf32>
    %440 = vector.extract_strided_slice %436 {offsets = [0, 192], sizes = [2, 64], strides = [1, 1]} : vector<2x256xf32> to vector<2x64xf32>
    %441 = arith.mulf %438, %420 : vector<2x64xf32>
    %442 = arith.mulf %437, %439 : vector<2x64xf32>
    %443 = arith.addf %441, %442 : vector<2x64xf32>
    %444 = math.tanh %443 : vector<2x64xf32>
    %445 = arith.mulf %440, %444 : vector<2x64xf32>
    %446 = arith.truncf %445 : vector<2x64xf32> to vector<2x64xbf16>
    %c256 = arith.constant 256 : index
    %c0_178 = arith.constant 0 : index
    %447 = vector.load %arg7[%c256, %c0_178] : memref<512x128xbf16, #tpu.memory_space<vmem>>, vector<64x128xbf16>
    %cst_179 = arith.constant dense<0.000000e+00> : vector<2x128xf32>
    %448 = tpu.matmul %446, %447, %cst_179 {dimension_numbers = #tpu.dot_dimension_numbers<[1], [0], [0], [1], [0, 0, 1, 1], [], []>} : vector<2x64xbf16>, vector<64x128xbf16>, vector<2x128xf32> -> vector<2x128xf32>
    %449 = arith.addf %426, %448 : vector<2x128xf32>
    %c5_180 = arith.constant 5 : index
    %c0_181 = arith.constant 0 : index
    %c0_182 = arith.constant 0 : index
    %450 = vector.load %arg12[%c5_180, %c0_181, %c0_182] : memref<8x2x256xf32, #tpu.memory_space<vmem>>, vector<1x2x256xf32>
    %451 = vector.shape_cast %450 : vector<1x2x256xf32> to vector<2x256xf32>
    %cst_183 = arith.constant dense<0.000000e+00> : vector<2x256xf32>
    %452 = tpu.matmul %446, %276, %cst_183 {dimension_numbers = #tpu.dot_dimension_numbers<[1], [0], [0], [1], [0, 0, 1, 1], [], []>} : vector<2x64xbf16>, vector<64x256xbf16>, vector<2x256xf32> -> vector<2x256xf32>
    %453 = arith.addf %451, %452 : vector<2x256xf32>
    %454 = math.tanh %453 : vector<2x256xf32>
    %cst_184 = arith.constant 5.000000e-01 : f32
    %455 = vector.broadcast %cst_184 : f32 to vector<2x256xf32>
    %456 = arith.mulf %455, %454 : vector<2x256xf32>
    %cst_185 = arith.constant 5.000000e-01 : f32
    %457 = vector.broadcast %cst_185 : f32 to vector<2x256xf32>
    %458 = arith.addf %456, %457 : vector<2x256xf32>
    %459 = arith.select %5, %454, %458 : vector<2x256xi1>, vector<2x256xf32>
    %460 = vector.extract_strided_slice %459 {offsets = [0, 0], sizes = [2, 64], strides = [1, 1]} : vector<2x256xf32> to vector<2x64xf32>
    %461 = vector.extract_strided_slice %459 {offsets = [0, 64], sizes = [2, 64], strides = [1, 1]} : vector<2x256xf32> to vector<2x64xf32>
    %462 = vector.extract_strided_slice %459 {offsets = [0, 128], sizes = [2, 64], strides = [1, 1]} : vector<2x256xf32> to vector<2x64xf32>
    %463 = vector.extract_strided_slice %459 {offsets = [0, 192], sizes = [2, 64], strides = [1, 1]} : vector<2x256xf32> to vector<2x64xf32>
    %464 = arith.mulf %461, %443 : vector<2x64xf32>
    %465 = arith.mulf %460, %462 : vector<2x64xf32>
    %466 = arith.addf %464, %465 : vector<2x64xf32>
    %467 = math.tanh %466 : vector<2x64xf32>
    %468 = arith.mulf %463, %467 : vector<2x64xf32>
    %469 = arith.truncf %468 : vector<2x64xf32> to vector<2x64xbf16>
    %c320 = arith.constant 320 : index
    %c0_186 = arith.constant 0 : index
    %470 = vector.load %arg7[%c320, %c0_186] : memref<512x128xbf16, #tpu.memory_space<vmem>>, vector<64x128xbf16>
    %cst_187 = arith.constant dense<0.000000e+00> : vector<2x128xf32>
    %471 = tpu.matmul %469, %470, %cst_187 {dimension_numbers = #tpu.dot_dimension_numbers<[1], [0], [0], [1], [0, 0, 1, 1], [], []>} : vector<2x64xbf16>, vector<64x128xbf16>, vector<2x128xf32> -> vector<2x128xf32>
    %472 = arith.addf %449, %471 : vector<2x128xf32>
    %c6_188 = arith.constant 6 : index
    %c0_189 = arith.constant 0 : index
    %c0_190 = arith.constant 0 : index
    %473 = vector.load %arg12[%c6_188, %c0_189, %c0_190] : memref<8x2x256xf32, #tpu.memory_space<vmem>>, vector<1x2x256xf32>
    %474 = vector.shape_cast %473 : vector<1x2x256xf32> to vector<2x256xf32>
    %cst_191 = arith.constant dense<0.000000e+00> : vector<2x256xf32>
    %475 = tpu.matmul %469, %276, %cst_191 {dimension_numbers = #tpu.dot_dimension_numbers<[1], [0], [0], [1], [0, 0, 1, 1], [], []>} : vector<2x64xbf16>, vector<64x256xbf16>, vector<2x256xf32> -> vector<2x256xf32>
    %476 = arith.addf %474, %475 : vector<2x256xf32>
    %477 = math.tanh %476 : vector<2x256xf32>
    %cst_192 = arith.constant 5.000000e-01 : f32
    %478 = vector.broadcast %cst_192 : f32 to vector<2x256xf32>
    %479 = arith.mulf %478, %477 : vector<2x256xf32>
    %cst_193 = arith.constant 5.000000e-01 : f32
    %480 = vector.broadcast %cst_193 : f32 to vector<2x256xf32>
    %481 = arith.addf %479, %480 : vector<2x256xf32>
    %482 = arith.select %5, %477, %481 : vector<2x256xi1>, vector<2x256xf32>
    %483 = vector.extract_strided_slice %482 {offsets = [0, 0], sizes = [2, 64], strides = [1, 1]} : vector<2x256xf32> to vector<2x64xf32>
    %484 = vector.extract_strided_slice %482 {offsets = [0, 64], sizes = [2, 64], strides = [1, 1]} : vector<2x256xf32> to vector<2x64xf32>
    %485 = vector.extract_strided_slice %482 {offsets = [0, 128], sizes = [2, 64], strides = [1, 1]} : vector<2x256xf32> to vector<2x64xf32>
    %486 = vector.extract_strided_slice %482 {offsets = [0, 192], sizes = [2, 64], strides = [1, 1]} : vector<2x256xf32> to vector<2x64xf32>
    %487 = arith.mulf %484, %466 : vector<2x64xf32>
    %488 = arith.mulf %483, %485 : vector<2x64xf32>
    %489 = arith.addf %487, %488 : vector<2x64xf32>
    %490 = math.tanh %489 : vector<2x64xf32>
    %491 = arith.mulf %486, %490 : vector<2x64xf32>
    %492 = arith.truncf %491 : vector<2x64xf32> to vector<2x64xbf16>
    %c384 = arith.constant 384 : index
    %c0_194 = arith.constant 0 : index
    %493 = vector.load %arg7[%c384, %c0_194] : memref<512x128xbf16, #tpu.memory_space<vmem>>, vector<64x128xbf16>
    %cst_195 = arith.constant dense<0.000000e+00> : vector<2x128xf32>
    %494 = tpu.matmul %492, %493, %cst_195 {dimension_numbers = #tpu.dot_dimension_numbers<[1], [0], [0], [1], [0, 0, 1, 1], [], []>} : vector<2x64xbf16>, vector<64x128xbf16>, vector<2x128xf32> -> vector<2x128xf32>
    %495 = arith.addf %472, %494 : vector<2x128xf32>
    %c7_196 = arith.constant 7 : index
    %c0_197 = arith.constant 0 : index
    %c0_198 = arith.constant 0 : index
    %496 = vector.load %arg12[%c7_196, %c0_197, %c0_198] : memref<8x2x256xf32, #tpu.memory_space<vmem>>, vector<1x2x256xf32>
    %497 = vector.shape_cast %496 : vector<1x2x256xf32> to vector<2x256xf32>
    %cst_199 = arith.constant dense<0.000000e+00> : vector<2x256xf32>
    %498 = tpu.matmul %492, %276, %cst_199 {dimension_numbers = #tpu.dot_dimension_numbers<[1], [0], [0], [1], [0, 0, 1, 1], [], []>} : vector<2x64xbf16>, vector<64x256xbf16>, vector<2x256xf32> -> vector<2x256xf32>
    %499 = arith.addf %497, %498 : vector<2x256xf32>
    %500 = math.tanh %499 : vector<2x256xf32>
    %cst_200 = arith.constant 5.000000e-01 : f32
    %501 = vector.broadcast %cst_200 : f32 to vector<2x256xf32>
    %502 = arith.mulf %501, %500 : vector<2x256xf32>
    %cst_201 = arith.constant 5.000000e-01 : f32
    %503 = vector.broadcast %cst_201 : f32 to vector<2x256xf32>
    %504 = arith.addf %502, %503 : vector<2x256xf32>
    %505 = arith.select %5, %500, %504 : vector<2x256xi1>, vector<2x256xf32>
    %506 = vector.extract_strided_slice %505 {offsets = [0, 0], sizes = [2, 64], strides = [1, 1]} : vector<2x256xf32> to vector<2x64xf32>
    %507 = vector.extract_strided_slice %505 {offsets = [0, 64], sizes = [2, 64], strides = [1, 1]} : vector<2x256xf32> to vector<2x64xf32>
    %508 = vector.extract_strided_slice %505 {offsets = [0, 128], sizes = [2, 64], strides = [1, 1]} : vector<2x256xf32> to vector<2x64xf32>
    %509 = vector.extract_strided_slice %505 {offsets = [0, 192], sizes = [2, 64], strides = [1, 1]} : vector<2x256xf32> to vector<2x64xf32>
    %510 = arith.mulf %507, %489 : vector<2x64xf32>
    %511 = arith.mulf %506, %508 : vector<2x64xf32>
    %512 = arith.addf %510, %511 : vector<2x64xf32>
    %513 = math.tanh %512 : vector<2x64xf32>
    %514 = arith.mulf %509, %513 : vector<2x64xf32>
    %515 = arith.truncf %514 : vector<2x64xf32> to vector<2x64xbf16>
    %c448 = arith.constant 448 : index
    %c0_202 = arith.constant 0 : index
    %516 = vector.load %arg7[%c448, %c0_202] : memref<512x128xbf16, #tpu.memory_space<vmem>>, vector<64x128xbf16>
    %cst_203 = arith.constant dense<0.000000e+00> : vector<2x128xf32>
    %517 = tpu.matmul %515, %516, %cst_203 {dimension_numbers = #tpu.dot_dimension_numbers<[1], [0], [0], [1], [0, 0, 1, 1], [], []>} : vector<2x64xbf16>, vector<64x128xbf16>, vector<2x128xf32> -> vector<2x128xf32>
    %518 = arith.addf %495, %517 : vector<2x128xf32>
    %c0_204 = arith.constant 0 : index
    %c0_205 = arith.constant 0 : index
    %519 = vector.load %arg8[%c0_204, %c0_205] : memref<1x128xf32, #tpu.memory_space<vmem>>, vector<1x128xf32>
    %520 = vector.broadcast %519 : vector<1x128xf32> to vector<2x128xf32>
    %521 = arith.addf %518, %520 : vector<2x128xf32>
    %cst_206 = arith.constant 0.000000e+00 : f32
    %522 = vector.broadcast %cst_206 : f32 to vector<2x128xf32>
    %523 = arith.maximumf %521, %522 : vector<2x128xf32>
    %524 = arith.truncf %523 : vector<2x128xf32> to vector<2x128xbf16>
    %c0_207 = arith.constant 0 : index
    %c0_208 = arith.constant 0 : index
    %525 = vector.load %arg9[%c0_207, %c0_208] : memref<128x128xbf16, #tpu.memory_space<vmem>>, vector<128x128xbf16>
    %cst_209 = arith.constant dense<0.000000e+00> : vector<2x128xf32>
    %526 = tpu.matmul %524, %525, %cst_209 {dimension_numbers = #tpu.dot_dimension_numbers<[1], [0], [0], [1], [0, 0, 1, 1], [], []>} : vector<2x128xbf16>, vector<128x128xbf16>, vector<2x128xf32> -> vector<2x128xf32>
    %c0_210 = arith.constant 0 : index
    %c0_211 = arith.constant 0 : index
    %527 = vector.load %arg10[%c0_210, %c0_211] : memref<1x128xf32, #tpu.memory_space<vmem>>, vector<1x128xf32>
    %528 = vector.broadcast %527 : vector<1x128xf32> to vector<2x128xf32>
    %529 = arith.addf %526, %528 : vector<2x128xf32>
    %c0_212 = arith.constant 0 : index
    %c0_213 = arith.constant 0 : index
    %530 = vector.load %arg11[%c0_212, %c0_213] : memref<2x128xf32, #tpu.memory_space<vmem>>, vector<2x128xf32>
    tpu.vector_store %arg11[%c0_212, %c0_213], %529 {strides = array<i32>} : memref<2x128xf32, #tpu.memory_space<vmem>>, vector<2x128xf32>,
    return
  }
}

</mosaic_0001>

<bundles_post_ra>
// kernel: lstm_module_forward.1
= control target key start
LH: loop header
LB: loop body
LE: loop exit
PB: predicated region body
PF: predicated region fallthrough
CT: control target
= control target key end

     0   :  { %v3360_v2 = vmov 0   ;;  %vm112_vm0 = vcmask 130048   ;;  %s4154_s0 = inlined_call_operand.vmem [shape: bf16[16,16], index: 0, kind: input, shape index: {}]   ;;  %s4155_s1 = inlined_call_operand.vmem [shape: bf16[16,256], index: 1, kind: input, shape index: {}]   ;;  %s4156_s2 = inlined_call_operand.vmem [shape: f32[1,256], index: 2, kind: input, shape index: {}]   ;;  %s4157_s3 = inlined_call_operand.vmem [shape: bf16[64,256], index: 3, kind: input, shape index: {}]   ;;  %s4158_s4 = inlined_call_operand.vmem [shape: bf16[64,256], index: 4, kind: input, shape index: {}]   ;;  %s4159_s5 = inlined_call_operand.vmem [shape: f32[1,256], index: 5, kind: input, shape index: {}]   ;;  %s4160_s6 = inlined_call_operand.vmem [shape: bf16[64,256], index: 6, kind: input, shape index: {}]   ;;  %s4161_s7 = inlined_call_operand.vmem [shape: bf16[512,128], index: 7, kind: input, shape index: {}]   ;;  %s4162_s8 = inlined_call_operand.vmem [shape: f32[1,128], index: 8, kind: input, shape index: {}]   ;;  %s4163_s9 = inlined_call_operand.vmem [shape: bf16[128,128], index: 9, kind: input, shape index: {}]   ;;  %s4164_s10 = inlined_call_operand.vmem [shape: f32[1,128], index: 10, kind: input, shape index: {}]   ;;  %s4165_s11 = inlined_call_operand.hbm [shape: f32[2,128], index: 11, kind: output, shape index: {}]  }
   0x1   :  { %v3192_v0 = vld [vmem:[%s4155_s1 + $0x4] ss:$8 sps:$4 sm:$0xff]   ;;  %v3194_v1 = vld [vmem:[%s4155_s1] ss:$8 sps:$4 sm:$0xff]   ;;  %148 = vmatprep.mubr.bf16.mxu1 %v3360_v2  ;;  %468 = vmatprep.mubr.bf16.mxu0 %v3360_v2  ;;  %v3450_v6 = vld [vmem:[%s4157_s3 + $0x14] ss:$8 sps:$4 sm:$0xff]  }
   0x2   :  { %116 = vmatprep.subr.bf16.mxu1 %v3192_v0  ;;  %v3195_v3 = vld [vmem:[%s4154_s0] sm:$0xff]   ;;  %v3459_v7 = vld [vmem:[%s4157_s3 + $0x10] ss:$8 sps:$4 sm:$0xff]   ;;  %v3477_v10 = vld [vmem:[%s4157_s3 + $0x34] ss:$8 sps:$4 sm:$0xff]  }
   0x3   :  { %117 = vmatpush1.bf16.msra.mxu1 %v3194_v1  ;;  %v3440_v4 = vld [vmem:[%s4157_s3 + $0x4] ss:$8 sps:$4 sm:$0xff]   ;;  %v3445_v5 = vld [vmem:[%s4157_s3] ss:$8 sps:$4 sm:$0xff]   ;;  %v3486_v11 = vld [vmem:[%s4157_s3 + $0x30] ss:$8 sps:$4 sm:$0xff]  }
   0x4   :  { %331 = vmatprep.subr.bf16.mxu1 %v3440_v4  ;;  %436 = vmatprep.subr.bf16.mxu0 %v3440_v4  ;;  %v3466_v8 = vld [vmem:[%s4157_s3 + $0x24] ss:$8 sps:$4 sm:$0xff]   ;;  %v3472_v9 = vld [vmem:[%s4157_s3 + $0x20] ss:$8 sps:$4 sm:$0xff]  }
   0x5   :  { %437 = vmatpush1.bf16.msra.mxu0 %v3445_v5 }
   0x6   :  { %2923 = vmatmul.mubr.msk.bf16.vlgmr.msra.gmra.mrb[0].mxu1 %vm112_vm0, %v3195_v3  ;;  %438 = vmatprep.subr.bf16.mxu0 %v3450_v6 }
   0x7   :  { %332 = vmatpush1.bf16.msra.mxu1 %v3445_v5  ;;  %363 = vmatprep.mubr.bf16.mxu1 %v3360_v2 }
   0x8   :  { %333 = vmatprep.subr.bf16.mxu1 %v3450_v6 }
   0x9   :  { %439 = vmatpush1.bf16.msra.mxu0 %v3459_v7 }
   0xa   :  { %440 = vmatprep.subr.bf16.mxu0 %v3466_v8 }
   0xb   :  { %334 = vmatpush1.bf16.msra.mxu1 %v3459_v7 }
   0xc   :  { %335 = vmatprep.subr.bf16.mxu1 %v3466_v8 }
   0xd   :  { %441 = vmatpush1.bf16.msra.mxu0 %v3472_v9 }
   0xe   :  { %442 = vmatprep.subr.bf16.mxu0 %v3477_v10 }
   0xf   :  { %336 = vmatpush1.bf16.msra.mxu1 %v3472_v9 }
  0x10   :  { %337 = vmatprep.subr.bf16.mxu1 %v3477_v10 }
  0x11   :  { %443 = vmatpush1.bf16.msra.mxu0 %v3486_v11 }
  0x12   :  { %642 = vmatprep.subr.bf16.mxu0 %v3440_v4 }
  0x13   :  { %338 = vmatpush1.bf16.msra.mxu1 %v3486_v11 }
  0x14   :  { %539 = vmatprep.subr.bf16.mxu1 %v3440_v4 }
  0x16   :  { %364 = vmatmul.mubr.bf16.vlgmr.msra.gmra.mrb[4].mxu1 %v3360_v2 }
  0x17   :  { %540 = vmatpush1.bf16.msra.mxu1 %v3445_v5  ;;  %571 = vmatprep.mubr.bf16.mxu1 %v3360_v2 }
  0x18   :  { %541 = vmatprep.subr.bf16.mxu1 %v3450_v6 }
  0x1b   :  { %542 = vmatpush1.bf16.msra.mxu1 %v3459_v7 }
  0x1c   :  { %543 = vmatprep.subr.bf16.mxu1 %v3466_v8 }
  0x1f   :  { %544 = vmatpush1.bf16.msra.mxu1 %v3472_v9 }
  0x20   :  { %545 = vmatprep.subr.bf16.mxu1 %v3477_v10 }
  0x23   :  { %546 = vmatpush1.bf16.msra.mxu1 %v3486_v11 }
  0x24   :  { %745 = vmatprep.subr.bf16.mxu1 %v3440_v4 }
  0x25   :  { %16 = vsyncpa [#allocation5], 0  ;;  %v40_v12 = vlaneseq  ;;  %v85_v17 = vld [vmem:[%s4156_s2] sm:$0x3]  ;;  %v3361_v19 = vmov 1983009808  }
  0x26   :  { %v171_v20 = vunpack.c.l.s4 %v3361_v19  ;;  %s3362_s2 = smov 64   ;;  %vm327_vm11 = vcmask 523264   ;;  %vm425_vm12 = vcmask 254976   ;;  %vm427_vm13 = vcmask 517376  }
  0x27   :  { %v41_v13 = vand.u32 127, %v40_v12  ;;  %v3506_v14 = vshrl.u32 %v40_v12, 7  ;;  %vm3364_vm14 = vmmov 0  }
  0x28   :  { %v172_v24 = vunpack.c.0.s8 %v171_v20 }
  0x29   :  { %v3508_v15 = vadd.s32 128, %v41_v13  ;;  %v89_v16 = vsub.s32 0, %v3506_v14  ;;  %v93_v18 = vsub.s32 1, %v3506_v14  ;;  %vm49_vm1 = vcmp.ge.s32.totalorder %v41_v13, 32 }
  0x2a   :  { %vm51_vm2 = vcmp.lt.s32.totalorder %v41_v13, 64  ;;  %vm55_vm6 = vcmp.ge.s32.totalorder %v41_v13, 96  ;;  %v3533_v35 = vsub.s32 %v172_v24, %v3506_v14 }
  0x2b   :  { %vm46_vm3 = vcmp.lt.s32.totalorder %v3508_v15, 192  ;;  %vm64_vm4 = vcmp.ge.s32.totalorder %v3508_v15, 160  ;;  %v90_v21 = vrot.slane %v85_v17, %v89_v16  ;;  %v94_v22 = vrot.slane %v85_v17, %v93_v18  ;;  %vm53_vm5 = vmand %vm49_vm1, %vm51_vm2 }
  0x2c   :  { %vm66_vm7 = vmand %vm64_vm4, %vm46_vm3  ;;  %vm70_vm8 = vcmp.ge.s32.totalorder %v3508_v15, 224  ;;  %v3262_v15 = vld [vmem:[%s4161_s7 + $0xf0] sm:$0xff]  }
  0x2d   :  { %vm3524_vm9 = vmor %vm53_vm5, %vm55_vm6 }
  0x2e   :  { %vm3528_vm10 = vmor %vm66_vm7, %vm70_vm8 }
  0xd9   :  { %v150_v23 = vpop.f32.mrb[0].mxu1 }
  0xda   :  { %v151_v25 = vadd.f32 %v150_v23, %v90_v21  ;;  %v152_v26 = vpop.f32.mrb[1].mxu1 }
  0xdb   :  { %v153_v28 = vadd.f32 %v152_v26, %v94_v22  ;;  %v154_v29 = vpop.f32.mrb[2].mxu1 }
  0xdc   :  { %v161_v30 = vrot.slane %v151_v25, 2  ;;  %v180_v31 = vrot.slane %v151_v25, 6  ;;  %v155_v32 = vadd.f32 %v154_v29, %v90_v21  ;;  %v156_v34 = vpop.f32.mrb[3].mxu1 }
  0xdd   :  { %v162_v36 = vrot.slane %v153_v28, 2  ;;  %v181_v37 = vrot.slane %v153_v28, 6  ;;  %v157_v38 = vadd.f32 %v156_v34, %v94_v22 }
  0xde   :  { %v165_v39 = vsel %vm3524_vm9, %v155_v32, %v161_v30  ;;  %v184_v40 = vsel %vm3524_vm9, %v155_v32, %v180_v31  ;;  %v224_v41 = vrot.slane %v155_v32, 2  ;;  %v244_v42 = vrot.slane %v155_v32, 6 }
  0xdf   :  { %v166_v43 = vsel %vm3528_vm10, %v157_v38, %v162_v36  ;;  %v185_v44 = vsel %vm3528_vm10, %v157_v38, %v181_v37  ;;  %v225_v45 = vrot.slane %v157_v38, 2  ;;  %v245_v46 = vrot.slane %v157_v38, 6 }
  0xe0   :  { %v228_v47 = vsel %vm3524_vm9, %v151_v25, %v224_v41  ;;  %v248_v48 = vsel %vm3524_vm9, %v151_v25, %v244_v42  ;;  %v169_v49 = vcombine.high %v165_v39, %v166_v43  ;;  %v188_v50 = vcombine.high %v184_v40, %v185_v44 }
  0xe1   :  { %v199_v51 = vcombine.low %v165_v39, %v166_v43  ;;  %v211_v52 = vcombine.low %v184_v40, %v185_v44  ;;  %v229_v53 = vsel %vm3528_vm10, %v153_v28, %v225_v45  ;;  %v249_v54 = vsel %vm3528_vm10, %v153_v28, %v245_v46 }
  0xe2   :  { %v176_v55 = vrot.slane %v169_v49, %v3533_v35  ;;  %2924 = vst.sshfl [vmem:[#allocation2 + $0x4] sm:$0x33 pattern:$0x76325410] %v188_v50  ;;  %v232_v56 = vcombine.high %v228_v47, %v229_v53  ;;  %v252_v57 = vcombine.high %v248_v48, %v249_v54  ;;  %v263_v58 = vcombine.low %v228_v47, %v229_v53 }
  0xe3   :  { %v206_v59 = vrot.slane %v199_v51, %v3533_v35  ;;  %2925 = vst.sshfl [vmem:[#allocation2 + $0xc] sm:$0x33 pattern:$0x76325410] %v211_v52  ;;  %v275_v60 = vcombine.low %v248_v48, %v249_v54 }
  0xe4   :  { %v177_v61 = vcombine.high %v176_v55, %v176_v55  ;;  %v239_v62 = vrot.slane %v232_v56, %v3533_v35  ;;  %2926 = vst.sshfl [vmem:[#allocation2 + $0x14] sm:$0x33 pattern:$0x76325410] %v252_v57  ;;  %v270_v63 = vrot.slane %v263_v58, %v3533_v35 }
  0xe5   :  { %v207_v0 = vcombine.high %v206_v59, %v206_v59  ;;  %2927 = vst.sshfl [vmem:[#allocation2 + $0x1c] sm:$0x33 pattern:$0x76325410] %v275_v60 }
  0xe6   :  { %179 = vst [vmem:[#allocation2] sm:$0xf] %v177_v61  ;;  %v240_v1 = vcombine.high %v239_v62, %v239_v62  ;;  %v271_v3 = vcombine.high %v270_v63, %v270_v63 }
  0xe7   :  { %210 = vst [vmem:[#allocation2 + $0x8] sm:$0xf] %v207_v0 }
  0xe8   :  { %243 = vst [vmem:[#allocation2 + $0x10] sm:$0xf] %v240_v1  ;;  %274 = vst [vmem:[#allocation2 + $0x18] sm:$0xf] %v271_v3 }
  0xe9   :  { %v365_v12 = vpop.f32.mrb[4].mxu1  ;;  %v429_v49 = vld [vmem:[#allocation2 + $0x4] sm:$0xf] }
  0xea   :  { %v367_v13 = vpop.f32.mrb[5].mxu1 }
  0xeb   :  { %v374_v17 = vcombine.low %v365_v12, %v367_v13  ;;  %v369_v19 = vpop.f32.mrb[6].mxu1 }
  0xec   :  { %v370_v20 = vpop.f32.mrb[7].mxu1 }
  0xed   :  { %v286_v21 = vld [vmem:[#allocation2] sm:$0xf]  ;;  %v381_v22 = vrot.slane %v374_v17, %v3533_v35 }
  0xef   :  { %v383_v23 = vadd.f32 %v381_v22, %v286_v21  ;;  %v532_v22 = vld [vmem:[#allocation2 + $0x8] sm:$0xf] }
  0xf1   :  { %3272 = vtanh.f32 %v383_v23 }
  0xfb   :  { %v3273_v24 = vpop.eup %3272 }
  0xfc   :  { %v385_v25 = vmul.f32 0.5, %v3273_v24  ;;  %v394_v28 = vrot.slane %v3273_v24, %v3533_v35 }
  0xfe   :  { %v386_v26 = vadd.f32 0.5, %v385_v25  ;;  %v395_v30 = vcombine.high %v394_v28, %v394_v28 }
 0x100   :  { %v405_v29 = vrot.slane %v386_v26, %v3533_v35 }
 0x102   :  { %v406_v31 = vcombine.high %v405_v29, %v405_v29  ;;  %v411_v36 = vmul.f32 0.0, %v405_v29 }
 0x104   :  { %v410_v32 = vsel %vm46_vm3, %v395_v30, %v406_v31 }
 0x105   :  { %v412_v34 = vmul.f32 %v410_v32, %v405_v29 }
 0x107   :  { %414 = vrot.lane.b32.xlu0 %v412_v34, %s3362_s2 }
 0x179   :  { %v415_v37 = vpop.permute.xlu0 %414 }
 0x17a   :  { %v417_v38 = vadd.f32 %v415_v37, %v411_v36 }
 0x17c   :  { %3274 = vtanh.f32 %v417_v38 }
 0x186   :  { %v3275_v39 = vpop.eup %3274 }
 0x187   :  { %v3561_v40 = vmul.f32 %v3275_v39, %v410_v32 }
 0x189   :  { %v420_v41 = vpack.c.bf16 %v3561_v40, %v3561_v40 }
 0x18b   :  { %431 = vrot.lane.b32.xlu0 %v420_v41, %s3362_s2 }
 0x1fd   :  { %v432_v42 = vpop.permute.xlu0 %431 }
 0x1fe   :  { %2936 = vmatmul.mubr.msk.bf16.vlgmr.msra.gmra.mrb[0].mxu0 %vm327_vm11, %v432_v42 }
 0x1ff   :  { %643 = vmatpush1.bf16.msra.mxu0 %v3445_v5  ;;  %674 = vmatprep.mubr.bf16.mxu0 %v3360_v2 }
 0x200   :  { %644 = vmatprep.subr.bf16.mxu0 %v3450_v6 }
 0x203   :  { %645 = vmatpush1.bf16.msra.mxu0 %v3459_v7 }
 0x204   :  { %646 = vmatprep.subr.bf16.mxu0 %v3466_v8 }
 0x207   :  { %647 = vmatpush1.bf16.msra.mxu0 %v3472_v9 }
 0x208   :  { %648 = vmatprep.subr.bf16.mxu0 %v3477_v10 }
 0x20b   :  { %649 = vmatpush1.bf16.msra.mxu0 %v3486_v11 }
 0x20c   :  { %848 = vmatprep.subr.bf16.mxu0 %v3440_v4 }
 0x2d1   :  { %v470_v43 = vpop.f32.mrb[0].mxu0 }
 0x2d2   :  { %v472_v44 = vpop.f32.mrb[1].mxu0 }
 0x2d3   :  { %v479_v45 = vcombine.low %v470_v43, %v472_v44  ;;  %v474_v46 = vpop.f32.mrb[2].mxu0 }
 0x2d4   :  { %v475_v47 = vpop.f32.mrb[3].mxu0 }
 0x2d5   :  { %v486_v48 = vrot.slane %v479_v45, %v3533_v35 }
 0x2d7   :  { %v488_v50 = vadd.f32 %v486_v48, %v429_v49 }
 0x2d9   :  { %3276 = vtanh.f32 %v488_v50  ;;  %v635_v50 = vld [vmem:[#allocation2 + $0xc] sm:$0xf] }
 0x2e3   :  { %v3277_v51 = vpop.eup %3276 }
 0x2e4   :  { %v490_v52 = vmul.f32 0.5, %v3277_v51  ;;  %v499_v54 = vrot.slane %v3277_v51, %v3533_v35 }
 0x2e6   :  { %v491_v53 = vadd.f32 0.5, %v490_v52  ;;  %v500_v56 = vcombine.high %v499_v54, %v499_v54 }
 0x2e8   :  { %v510_v55 = vrot.slane %v491_v53, %v3533_v35 }
 0x2ea   :  { %v511_v57 = vcombine.high %v510_v55, %v510_v55  ;;  %v516_v60 = vmul.f32 %v510_v55, %v417_v38 }
 0x2ec   :  { %v515_v58 = vsel %vm46_vm3, %v500_v56, %v511_v57 }
 0x2ed   :  { %v517_v59 = vmul.f32 %v515_v58, %v510_v55 }
 0x2ef   :  { %519 = vrot.lane.b32.xlu1 %v517_v59, %s3362_s2 }
 0x361   :  { %v520_v61 = vpop.permute.xlu1 %519 }
 0x362   :  { %v522_v62 = vadd.f32 %v520_v61, %v516_v60 }
 0x364   :  { %3278 = vtanh.f32 %v522_v62 }
 0x36e   :  { %v3279_v63 = vpop.eup %3278 }
 0x36f   :  { %v3582_v0 = vmul.f32 %v3279_v63, %v515_v58 }
 0x371   :  { %v525_v1 = vpack.c.bf16 %v3582_v0, %v3582_v0 }
 0x373   :  { %534 = vrot.lane.b32.xlu1 %v525_v1, %s3362_s2 }
 0x3e5   :  { %v535_v3 = vpop.permute.xlu1 %534 }
 0x3e6   :  { %2937 = vmatmul.mubr.msk.bf16.vlgmr.msra.gmra.mrb[8].mxu1 %vm327_vm11, %v535_v3 }
 0x3e7   :  { %746 = vmatpush1.bf16.msra.mxu1 %v3445_v5  ;;  %777 = vmatprep.mubr.bf16.mxu1 %v3360_v2 }
 0x3e8   :  { %747 = vmatprep.subr.bf16.mxu1 %v3450_v6 }
 0x3eb   :  { %748 = vmatpush1.bf16.msra.mxu1 %v3459_v7 }
 0x3ec   :  { %749 = vmatprep.subr.bf16.mxu1 %v3466_v8 }
 0x3ef   :  { %750 = vmatpush1.bf16.msra.mxu1 %v3472_v9 }
 0x3f0   :  { %751 = vmatprep.subr.bf16.mxu1 %v3477_v10 }
 0x3f3   :  { %752 = vmatpush1.bf16.msra.mxu1 %v3486_v11 }
 0x3f4   :  { %951 = vmatprep.subr.bf16.mxu1 %v3440_v4 }
 0x4b9   :  { %v573_v12 = vpop.f32.mrb[8].mxu1 }
 0x4ba   :  { %v575_v13 = vpop.f32.mrb[9].mxu1 }
 0x4bb   :  { %v582_v17 = vcombine.low %v573_v12, %v575_v13  ;;  %v577_v19 = vpop.f32.mrb[10].mxu1 }
 0x4bc   :  { %v578_v20 = vpop.f32.mrb[11].mxu1 }
 0x4bd   :  { %v589_v21 = vrot.slane %v582_v17, %v3533_v35 }
 0x4bf   :  { %v591_v23 = vadd.f32 %v589_v21, %v532_v22 }
 0x4c1   :  { %3280 = vtanh.f32 %v591_v23  ;;  %v738_v23 = vld [vmem:[#allocation2 + $0x10] sm:$0xf] }
 0x4cb   :  { %v3281_v24 = vpop.eup %3280 }
 0x4cc   :  { %v593_v25 = vmul.f32 0.5, %v3281_v24  ;;  %v602_v28 = vrot.slane %v3281_v24, %v3533_v35 }
 0x4ce   :  { %v594_v26 = vadd.f32 0.5, %v593_v25  ;;  %v603_v30 = vcombine.high %v602_v28, %v602_v28 }
 0x4d0   :  { %v613_v29 = vrot.slane %v594_v26, %v3533_v35 }
 0x4d2   :  { %v614_v31 = vcombine.high %v613_v29, %v613_v29  ;;  %v619_v36 = vmul.f32 %v613_v29, %v522_v62 }
 0x4d4   :  { %v618_v32 = vsel %vm46_vm3, %v603_v30, %v614_v31 }
 0x4d5   :  { %v620_v34 = vmul.f32 %v618_v32, %v613_v29 }
 0x4d7   :  { %622 = vrot.lane.b32.xlu0 %v620_v34, %s3362_s2 }
 0x549   :  { %v623_v37 = vpop.permute.xlu0 %622 }
 0x54a   :  { %v625_v38 = vadd.f32 %v623_v37, %v619_v36 }
 0x54c   :  { %3282 = vtanh.f32 %v625_v38 }
 0x556   :  { %v3283_v39 = vpop.eup %3282 }
 0x557   :  { %v3603_v41 = vmul.f32 %v3283_v39, %v618_v32 }
 0x559   :  { %v628_v42 = vpack.c.bf16 %v3603_v41, %v3603_v41 }
 0x55b   :  { %637 = vrot.lane.b32.xlu1 %v628_v42, %s3362_s2 }
 0x5cd   :  { %v638_v43 = vpop.permute.xlu1 %637 }
 0x5ce   :  { %2938 = vmatmul.mubr.msk.bf16.vlgmr.msra.gmra.mrb[4].mxu0 %vm327_vm11, %v638_v43 }
 0x5cf   :  { %849 = vmatpush1.bf16.msra.mxu0 %v3445_v5  ;;  %880 = vmatprep.mubr.bf16.mxu0 %v3360_v2 }
 0x5d0   :  { %850 = vmatprep.subr.bf16.mxu0 %v3450_v6 }
 0x5d3   :  { %851 = vmatpush1.bf16.msra.mxu0 %v3459_v7 }
 0x5d4   :  { %852 = vmatprep.subr.bf16.mxu0 %v3466_v8 }
 0x5d7   :  { %853 = vmatpush1.bf16.msra.mxu0 %v3472_v9 }
 0x5d8   :  { %854 = vmatprep.subr.bf16.mxu0 %v3477_v10 }
 0x5db   :  { %855 = vmatpush1.bf16.msra.mxu0 %v3486_v11 }
 0x5dc   :  { %1054 = vmatprep.subr.bf16.mxu0 %v3440_v4 }
 0x6a1   :  { %v676_v44 = vpop.f32.mrb[4].mxu0 }
 0x6a2   :  { %v678_v45 = vpop.f32.mrb[5].mxu0 }
 0x6a3   :  { %v685_v46 = vcombine.low %v676_v44, %v678_v45  ;;  %v680_v47 = vpop.f32.mrb[6].mxu0 }
 0x6a4   :  { %v681_v48 = vpop.f32.mrb[7].mxu0 }
 0x6a5   :  { %v692_v49 = vrot.slane %v685_v46, %v3533_v35 }
 0x6a7   :  { %v694_v51 = vadd.f32 %v692_v49, %v635_v50 }
 0x6a9   :  { %3284 = vtanh.f32 %v694_v51  ;;  %v841_v51 = vld [vmem:[#allocation2 + $0x14] sm:$0xf] }
 0x6b3   :  { %v3285_v52 = vpop.eup %3284 }
 0x6b4   :  { %v696_v53 = vmul.f32 0.5, %v3285_v52  ;;  %v705_v55 = vrot.slane %v3285_v52, %v3533_v35 }
 0x6b6   :  { %v697_v54 = vadd.f32 0.5, %v696_v53  ;;  %v706_v57 = vcombine.high %v705_v55, %v705_v55 }
 0x6b8   :  { %v716_v56 = vrot.slane %v697_v54, %v3533_v35 }
 0x6ba   :  { %v717_v58 = vcombine.high %v716_v56, %v716_v56  ;;  %v722_v60 = vmul.f32 %v716_v56, %v625_v38 }
 0x6bc   :  { %v721_v4 = vsel %vm46_vm3, %v706_v57, %v717_v58 }
 0x6bd   :  { %v723_v59 = vmul.f32 %v721_v4, %v716_v56 }
 0x6bf   :  { %725 = vrot.lane.b32.xlu0 %v723_v59, %s3362_s2 }
 0x731   :  { %v726_v61 = vpop.permute.xlu0 %725 }
 0x732   :  { %v728_v62 = vadd.f32 %v726_v61, %v722_v60 }
 0x734   :  { %3286 = vtanh.f32 %v728_v62 }
 0x73e   :  { %v3287_v63 = vpop.eup %3286 }
 0x73f   :  { %v3624_v1 = vmul.f32 %v3287_v63, %v721_v4 }
 0x741   :  { %v731_v3 = vpack.c.bf16 %v3624_v1, %v3624_v1 }
 0x743   :  { %740 = vrot.lane.b32.xlu1 %v731_v3, %s3362_s2 }
 0x7b5   :  { %v741_v12 = vpop.permute.xlu1 %740 }
 0x7b6   :  { %2939 = vmatmul.mubr.msk.bf16.vlgmr.msra.gmra.mrb[12].mxu1 %vm327_vm11, %v741_v12 }
 0x7b7   :  { %952 = vmatpush1.bf16.msra.mxu1 %v3445_v5  ;;  %983 = vmatprep.mubr.bf16.mxu1 %v3360_v2 }
 0x7b8   :  { %953 = vmatprep.subr.bf16.mxu1 %v3450_v6 }
 0x7bb   :  { %954 = vmatpush1.bf16.msra.mxu1 %v3459_v7 }
 0x7bc   :  { %955 = vmatprep.subr.bf16.mxu1 %v3466_v8 }
 0x7bf   :  { %956 = vmatpush1.bf16.msra.mxu1 %v3472_v9 }
 0x7c0   :  { %957 = vmatprep.subr.bf16.mxu1 %v3477_v10 }
 0x7c3   :  { %958 = vmatpush1.bf16.msra.mxu1 %v3486_v11 }
 0x889   :  { %v779_v13 = vpop.f32.mrb[12].mxu1 }
 0x88a   :  { %v781_v17 = vpop.f32.mrb[13].mxu1 }
 0x88b   :  { %v788_v19 = vcombine.low %v779_v13, %v781_v17  ;;  %v783_v20 = vpop.f32.mrb[14].mxu1 }
 0x88c   :  { %v784_v21 = vpop.f32.mrb[15].mxu1 }
 0x88d   :  { %v795_v22 = vrot.slane %v788_v19, %v3533_v35  ;;  %v944_v19 = vld [vmem:[#allocation2 + $0x18] sm:$0xf] }
 0x88f   :  { %v797_v24 = vadd.f32 %v795_v22, %v738_v23 }
 0x891   :  { %3288 = vtanh.f32 %v797_v24 }
 0x89b   :  { %v3289_v25 = vpop.eup %3288 }
 0x89c   :  { %v799_v26 = vmul.f32 0.5, %v3289_v25  ;;  %v808_v29 = vrot.slane %v3289_v25, %v3533_v35 }
 0x89e   :  { %v800_v28 = vadd.f32 0.5, %v799_v26  ;;  %v809_v31 = vcombine.high %v808_v29, %v808_v29 }
 0x8a0   :  { %v819_v30 = vrot.slane %v800_v28, %v3533_v35 }
 0x8a2   :  { %v820_v32 = vcombine.high %v819_v30, %v819_v30  ;;  %v825_v37 = vmul.f32 %v819_v30, %v728_v62 }
 0x8a4   :  { %v824_v34 = vsel %vm46_vm3, %v809_v31, %v820_v32 }
 0x8a5   :  { %v826_v36 = vmul.f32 %v824_v34, %v819_v30 }
 0x8a7   :  { %828 = vrot.lane.b32.xlu0 %v826_v36, %s3362_s2 }
 0x919   :  { %v829_v38 = vpop.permute.xlu0 %828 }
 0x91a   :  { %v831_v39 = vadd.f32 %v829_v38, %v825_v37 }
 0x91c   :  { %3290 = vtanh.f32 %v831_v39 }
 0x926   :  { %v3291_v42 = vpop.eup %3290 }
 0x927   :  { %v3644_v43 = vmul.f32 %v3291_v42, %v824_v34 }
 0x929   :  { %v834_v44 = vpack.c.bf16 %v3644_v43, %v3644_v43 }
 0x92b   :  { %843 = vrot.lane.b32.xlu1 %v834_v44, %s3362_s2 }
 0x99d   :  { %v844_v45 = vpop.permute.xlu1 %843 }
 0x99e   :  { %2940 = vmatmul.mubr.msk.bf16.vlgmr.msra.gmra.mrb[8].mxu0 %vm327_vm11, %v844_v45 }
 0x99f   :  { %1055 = vmatpush1.bf16.msra.mxu0 %v3445_v5  ;;  %1086 = vmatprep.mubr.bf16.mxu0 %v3360_v2 }
 0x9a0   :  { %1056 = vmatprep.subr.bf16.mxu0 %v3450_v6 }
 0x9a3   :  { %1057 = vmatpush1.bf16.msra.mxu0 %v3459_v7 }
 0x9a4   :  { %1058 = vmatprep.subr.bf16.mxu0 %v3466_v8 }
 0x9a7   :  { %1059 = vmatpush1.bf16.msra.mxu0 %v3472_v9 }
 0x9a8   :  { %1060 = vmatprep.subr.bf16.mxu0 %v3477_v10 }
 0x9ab   :  { %1061 = vmatpush1.bf16.msra.mxu0 %v3486_v11 }
 0xa71   :  { %v882_v46 = vpop.f32.mrb[8].mxu0 }
 0xa72   :  { %v884_v47 = vpop.f32.mrb[9].mxu0 }
 0xa73   :  { %v891_v48 = vcombine.low %v882_v46, %v884_v47  ;;  %v886_v49 = vpop.f32.mrb[10].mxu0 }
 0xa74   :  { %v887_v50 = vpop.f32.mrb[11].mxu0 }
 0xa75   :  { %v898_v5 = vrot.slane %v891_v48, %v3533_v35  ;;  %v1047_v48 = vld [vmem:[#allocation2 + $0x1c] sm:$0xf] }
 0xa77   :  { %v900_v52 = vadd.f32 %v898_v5, %v841_v51 }
 0xa79   :  { %3292 = vtanh.f32 %v900_v52 }
 0xa83   :  { %v3293_v6 = vpop.eup %3292 }
 0xa84   :  { %v902_v7 = vmul.f32 0.5, %v3293_v6  ;;  %v911_v8 = vrot.slane %v3293_v6, %v3533_v35 }
 0xa86   :  { %v903_v53 = vadd.f32 0.5, %v902_v7  ;;  %v912_v10 = vcombine.high %v911_v8, %v911_v8 }
 0xa88   :  { %v922_v9 = vrot.slane %v903_v53, %v3533_v35 }
 0xa8a   :  { %v923_v54 = vcombine.high %v922_v9, %v922_v9  ;;  %v928_v56 = vmul.f32 %v922_v9, %v831_v39 }
 0xa8c   :  { %v927_v11 = vsel %vm46_vm3, %v912_v10, %v923_v54  ;;  %v3208_v10 = vld [vmem:[%s4158_s4] ss:$8 sps:$4 sm:$0xff]   ;;  %v3210_v54 = vld [vmem:[%s4158_s4 + $0x4] ss:$8 sps:$4 sm:$0xff]  }
 0xa8d   :  { %v929_v55 = vmul.f32 %v927_v11, %v922_v9  ;;  %1223 = vmatprep.subr.bf16.mxu1 %v3210_v54 }
 0xa8f   :  { %931 = vrot.lane.b32.xlu0 %v929_v55, %s3362_s2  ;;  %v3211_v55 = vld [vmem:[%s4158_s4 + $0x10] ss:$8 sps:$4 sm:$0xff]  }
 0xb01   :  { %v932_v57 = vpop.permute.xlu0 %931 }
 0xb02   :  { %v934_v58 = vadd.f32 %v932_v57, %v928_v56 }
 0xb04   :  { %3294 = vtanh.f32 %v934_v58 }
 0xb0e   :  { %v3295_v4 = vpop.eup %3294 }
 0xb0f   :  { %v3664_v59 = vmul.f32 %v3295_v4, %v927_v11  ;;  %v3213_v11 = vld [vmem:[%s4158_s4 + $0x14] ss:$8 sps:$4 sm:$0xff]  }
 0xb11   :  { %v937_v60 = vpack.c.bf16 %v3664_v59, %v3664_v59 }
 0xb13   :  { %946 = vrot.lane.b32.xlu1 %v937_v60, %s3362_s2  ;;  %v3216_v60 = vld [vmem:[%s4158_s4 + $0x24] ss:$8 sps:$4 sm:$0xff]  }
 0xb85   :  { %v947_v61 = vpop.permute.xlu1 %946 }
 0xb86   :  { %2941 = vmatmul.mubr.msk.bf16.vlgmr.msra.gmra.mrb[16].mxu1 %vm327_vm11, %v947_v61 }
 0xb87   :  { %1255 = vmatprep.mubr.bf16.mxu1 %v3360_v2  ;;  %1224 = vmatpush1.bf16.msra.mxu1 %v3208_v10 }
 0xb88   :  { %1225 = vmatprep.subr.bf16.mxu1 %v3213_v11 }
 0xb8b   :  { %1226 = vmatpush1.bf16.msra.mxu1 %v3211_v55 }
 0xb8c   :  { %1227 = vmatprep.subr.bf16.mxu1 %v3216_v60 }
 0xc59   :  { %v985_v62 = vpop.f32.mrb[16].mxu1 }
 0xc5a   :  { %v987_v63 = vpop.f32.mrb[17].mxu1 }
 0xc5b   :  { %v994_v3 = vcombine.low %v985_v62, %v987_v63  ;;  %v989_v12 = vpop.f32.mrb[18].mxu1  ;;  %v3732_v62 = vld [vmem:[%s4160_s6] ss:$8 sps:$4 sm:$0xff]  }
 0xc5c   :  { %v990_v13 = vpop.f32.mrb[19].mxu1 }
 0xc5d   :  { %v1001_v17 = vrot.slane %v994_v3, %v3533_v35  ;;  %v3217_v3 = vld [vmem:[%s4158_s4 + $0x30] ss:$8 sps:$4 sm:$0xff]  }
 0xc5f   :  { %v1003_v20 = vadd.f32 %v1001_v17, %v944_v19  ;;  %v3751_v17 = vld [vmem:[%s4160_s6 + $0x14] ss:$8 sps:$4 sm:$0xff]  }
 0xc61   :  { %3296 = vtanh.f32 %v1003_v20  ;;  %v3758_v20 = vld [vmem:[%s4160_s6 + $0x10] ss:$8 sps:$4 sm:$0xff]  }
 0xc6b   :  { %v3297_v21 = vpop.eup %3296 }
 0xc6c   :  { %v1005_v22 = vmul.f32 0.5, %v3297_v21  ;;  %v1014_v24 = vrot.slane %v3297_v21, %v3533_v35  ;;  %v3763_v21 = vld [vmem:[%s4160_s6 + $0x24] ss:$8 sps:$4 sm:$0xff]  }
 0xc6e   :  { %v1006_v23 = vadd.f32 0.5, %v1005_v22  ;;  %v1015_v26 = vcombine.high %v1014_v24, %v1014_v24  ;;  %v3777_v24 = vld [vmem:[%s4160_s6 + $0x34] ss:$8 sps:$4 sm:$0xff]  }
 0xc70   :  { %v1025_v25 = vrot.slane %v1006_v23, %v3533_v35  ;;  %v3770_v23 = vld [vmem:[%s4160_s6 + $0x20] ss:$8 sps:$4 sm:$0xff]  }
 0xc72   :  { %v1026_v28 = vcombine.high %v1025_v25, %v1025_v25  ;;  %v1031_v31 = vmul.f32 %v1025_v25, %v934_v58 }
 0xc74   :  { %v1030_v29 = vsel %vm46_vm3, %v1015_v26, %v1026_v28 }
 0xc75   :  { %v1032_v30 = vmul.f32 %v1030_v29, %v1025_v25  ;;  %v3783_v25 = vld [vmem:[%s4160_s6 + $0x30] ss:$8 sps:$4 sm:$0xff]  }
 0xc77   :  { %1034 = vrot.lane.b32.xlu0 %v1032_v30, %s3362_s2 }
 0xce9   :  { %v1035_v32 = vpop.permute.xlu0 %1034 }
 0xcea   :  { %v1037_v34 = vadd.f32 %v1035_v32, %v1031_v31 }
 0xcec   :  { %3298 = vtanh.f32 %v1037_v34 }
 0xcf6   :  { %v3299_v36 = vpop.eup %3298 }
 0xcf7   :  { %v1039_v37 = vmul.f32 %v3299_v36, %v1030_v29 }
 0xcf9   :  { %v1040_v38 = vpack.c.bf16 %v1039_v37, %v1039_v37 }
 0xcfb   :  { %1049 = vrot.lane.b32.xlu1 %v1040_v38, %s3362_s2  ;;  %v1168_v38 = vld [vmem:[%s4159_s5] sm:$0x3] }
 0xcff   :  { %422 = vrot.lane.b32.xlu1 %v3561_v40, %s3362_s2 }
 0xd03   :  { %630 = vrot.lane.b32.xlu1 %v3603_v41, %s3362_s2 }
 0xd07   :  { %836 = vrot.lane.b32.xlu1 %v3644_v43, %s3362_s2 }
 0xd0b   :  { %1042 = vrot.lane.b32.xlu1 %v1039_v37, %s3362_s2 }
 0xd6d   :  { %v1050_v39 = vpop.permute.xlu1 %1049 }
 0xd6e   :  { %2942 = vmatmul.mubr.msk.bf16.vlgmr.msra.gmra.mrb[12].mxu0 %vm327_vm11, %v1050_v39  ;;  %v1173_v39 = vrot.slane %v1168_v38, %v89_v16 }
 0xd6f   :  { %1459 = vmatprep.mubr.bf16.mxu0 %v3360_v2 }
 0xd71   :  { %v423_v42 = vpop.permute.xlu1 %422 }
 0xd72   :  { %426 = vst.msk [vmem:[#allocation3] sm:$0x3] %vm425_vm12, %v423_v42 }
 0xd73   :  { %428 = vst.msk [vmem:[#allocation3 + $0xe] sm:$0x3] %vm427_vm13, %v423_v42  ;;  %v1177_v42 = vrot.slane %v1168_v38, %v93_v18 }
 0xd75   :  { %v631_v40 = vpop.permute.xlu1 %630 }
 0xd76   :  { %633 = vst.msk [vmem:[#allocation3 + $0x4] sm:$0x3] %vm425_vm12, %v631_v40 }
 0xd77   :  { %634 = vst.msk [vmem:[#allocation3 + $0xa] sm:$0x3] %vm427_vm13, %v631_v40 }
 0xd79   :  { %v837_v56 = vpop.permute.xlu1 %836 }
 0xd7d   :  { %v1043_v63 = vpop.permute.xlu1 %1042 }
 0xe41   :  { %v1088_v41 = vpop.f32.mrb[12].mxu0 }
 0xe42   :  { %v1090_v43 = vpop.f32.mrb[13].mxu0 }
 0xe43   :  { %v1097_v44 = vcombine.low %v1088_v41, %v1090_v43  ;;  %v1092_v45 = vpop.f32.mrb[14].mxu0 }
 0xe44   :  { %v1093_v46 = vpop.f32.mrb[15].mxu0 }
 0xe45   :  { %v1104_v47 = vrot.slane %v1097_v44, %v3533_v35 }
 0xe47   :  { %v1106_v49 = vadd.f32 %v1104_v47, %v1047_v48 }
 0xe49   :  { %3300 = vtanh.f32 %v1106_v49 }
 0xe53   :  { %v3301_v50 = vpop.eup %3300 }
 0xe54   :  { %v1108_v5 = vmul.f32 0.5, %v3301_v50  ;;  %v1117_v52 = vrot.slane %v3301_v50, %v3533_v35 }
 0xe56   :  { %v1109_v51 = vadd.f32 0.5, %v1108_v5  ;;  %v1118_v7 = vcombine.high %v1117_v52, %v1117_v52 }
 0xe58   :  { %v1128_v6 = vrot.slane %v1109_v51, %v3533_v35 }
 0xe5a   :  { %v1129_v53 = vcombine.high %v1128_v6, %v1128_v6  ;;  %v1134_v57 = vmul.f32 %v1128_v6, %v1037_v34 }
 0xe5c   :  { %v1133_v8 = vsel %vm46_vm3, %v1118_v7, %v1129_v53 }
 0xe5d   :  { %v1135_v9 = vmul.f32 %v1133_v8, %v1128_v6 }
 0xe5f   :  { %1137 = vrot.lane.b32.xlu0 %v1135_v9, %s3362_s2 }
 0xe63   :  { %527 = vrot.lane.b32.xlu0 %v3582_v0, %s3362_s2  ;;  %v3214_v0 = vld [vmem:[%s4158_s4 + $0x20] ss:$8 sps:$4 sm:$0xff]  }
 0xe64   :  { %1228 = vmatpush1.bf16.msra.mxu1 %v3214_v0 }
 0xe67   :  { %733 = vrot.lane.b32.xlu0 %v3624_v1, %s3362_s2  ;;  %v3219_v1 = vld [vmem:[%s4158_s4 + $0x34] ss:$8 sps:$4 sm:$0xff]  }
 0xe68   :  { %1229 = vmatprep.subr.bf16.mxu1 %v3219_v1 }
 0xe69   :  { %1230 = vmatpush1.bf16.msra.mxu1 %v3217_v3 }
 0xe6b   :  { %939 = vrot.lane.b32.xlu0 %v3664_v59, %s3362_s2  ;;  %v3727_v59 = vld [vmem:[%s4160_s6 + $0x4] ss:$8 sps:$4 sm:$0xff]  }
 0xe6c   :  { %1427 = vmatprep.subr.bf16.mxu0 %v3727_v59  ;;  %1532 = vmatprep.subr.bf16.mxu1 %v3727_v59 }
 0xe6d   :  { %1428 = vmatpush1.bf16.msra.mxu0 %v3732_v62 }
 0xe6e   :  { %1429 = vmatprep.subr.bf16.mxu0 %v3751_v17 }
 0xe71   :  { %1430 = vmatpush1.bf16.msra.mxu0 %v3758_v20 }
 0xe72   :  { %1431 = vmatprep.subr.bf16.mxu0 %v3763_v21 }
 0xe75   :  { %1432 = vmatpush1.bf16.msra.mxu0 %v3770_v23 }
 0xe76   :  { %1433 = vmatprep.subr.bf16.mxu0 %v3777_v24 }
 0xe79   :  { %1434 = vmatpush1.bf16.msra.mxu0 %v3783_v25 }
 0xe7c   :  { %1460 = vmatmul.mubr.bf16.vlgmr.msra.gmra.mrb[16].mxu0 %v3360_v2 }
 0xed1   :  { %v1138_v58 = vpop.permute.xlu0 %1137 }
 0xed2   :  { %v1140_v4 = vadd.f32 %v1138_v58, %v1134_v57 }
 0xed4   :  { %3302 = vtanh.f32 %v1140_v4 }
 0xed5   :  { %v528_v61 = vpop.permute.xlu0 %527 }
 0xed6   :  { %530 = vst.msk [vmem:[#allocation3 + $0x2] sm:$0x3] %vm425_vm12, %v528_v61 }
 0xed7   :  { %531 = vst.msk [vmem:[#allocation3 + $0xc] sm:$0x3] %vm427_vm13, %v528_v61  ;;  %1046 = vst.msk [vmem:[#allocation3 + $0x2] sm:$0x3] %vm427_vm13, %v1043_v63 }
 0xed8   :  { %1045 = vst.msk [vmem:[#allocation3 + $0xc] sm:$0x3] %vm425_vm12, %v1043_v63 }
 0xed9   :  { %v734_v12 = vpop.permute.xlu0 %733 }
 0xeda   :  { %736 = vst.msk [vmem:[#allocation3 + $0x6] sm:$0x3] %vm425_vm12, %v734_v12 }
 0xedb   :  { %737 = vst.msk [vmem:[#allocation3 + $0x8] sm:$0x3] %vm427_vm13, %v734_v12  ;;  %840 = vst.msk [vmem:[#allocation3 + $0x6] sm:$0x3] %vm427_vm13, %v837_v56 }
 0xedc   :  { %839 = vst.msk [vmem:[#allocation3 + $0x8] sm:$0x3] %vm425_vm12, %v837_v56 }
 0xedd   :  { %v940_v13 = vpop.permute.xlu0 %939 }
 0xede   :  { %v3303_v19 = vpop.eup %3302  ;;  %942 = vst.msk [vmem:[#allocation3 + $0xa] sm:$0x3] %vm425_vm12, %v940_v13 }
 0xedf   :  { %943 = vst.msk [vmem:[#allocation3 + $0x4] sm:$0x3] %vm427_vm13, %v940_v13  ;;  %v1142_v22 = vmul.f32 %v3303_v19, %v1133_v8 }
 0xee1   :  { %1144 = vrot.lane.b32.xlu0 %v1142_v22, %s3362_s2 }
 0xf4f   :  { %v1461_v31 = vpop.f32.mrb[16].mxu0 }
 0xf50   :  { %v1463_v32 = vpop.f32.mrb[17].mxu0 }
 0xf51   :  { %v1465_v34 = vpop.f32.mrb[18].mxu0  ;;  %v1470_v37 = vcombine.low %v1461_v31, %v1463_v32 }
 0xf52   :  { %v1466_v36 = vpop.f32.mrb[19].mxu0 }
 0xf53   :  { %v1145_v26 = vpop.permute.xlu0 %1144  ;;  %v1477_v22 = vrot.slane %v1470_v37, %v3533_v35 }
 0xf54   :  { %1147 = vst.msk [vmem:[#allocation3 + $0xe] sm:$0x3] %vm425_vm12, %v1145_v26 }
 0xf55   :  { %1148 = vst.msk [vmem:[#allocation3] sm:$0x3] %vm427_vm13, %v1145_v26 }
 0xf5b   :  { %v1158_v29 = vld [vmem:[#allocation3 + $0x8] sm:$0xff] }
 0xf5c   :  { %v1157_v28 = vld [vmem:[#allocation3] sm:$0xff] }
 0xf5d   :  { %v1159_v30 = vpack.c.bf16 %v1158_v29, %v1157_v28 }
 0xf5f   :  { %2951 = vmatmul.mubr.msk.bf16.vlgmr.msra.gmra.mrb[20].mxu1 %vm327_vm11, %v1159_v30 }
 0xf60   :  { %1533 = vmatpush1.bf16.msra.mxu1 %v3732_v62  ;;  %1564 = vmatprep.mubr.bf16.mxu1 %v3360_v2 }
 0xf61   :  { %1534 = vmatprep.subr.bf16.mxu1 %v3751_v17 }
 0xf64   :  { %1535 = vmatpush1.bf16.msra.mxu1 %v3758_v20 }
 0xf65   :  { %1536 = vmatprep.subr.bf16.mxu1 %v3763_v21 }
 0xf68   :  { %1537 = vmatpush1.bf16.msra.mxu1 %v3770_v23 }
 0xf69   :  { %1538 = vmatprep.subr.bf16.mxu1 %v3777_v24 }
 0xf6c   :  { %1539 = vmatpush1.bf16.msra.mxu1 %v3783_v25 }
0x1032   :  { %v1257_v40 = vpop.f32.mrb[20].mxu1 }
0x1033   :  { %v1258_v41 = vadd.f32 %v1257_v40, %v1173_v39  ;;  %v1259_v43 = vpop.f32.mrb[21].mxu1  ;;  %v3363_v40 = vmov 0.0  }
0x1034   :  { %v1260_v44 = vadd.f32 %v1259_v43, %v1177_v42  ;;  %v1261_v45 = vpop.f32.mrb[22].mxu1  ;;  %3082 = vmatprep.subr.bf16.mxu1 %v3363_v40  ;;  %3070 = vmatprep.subr.bf16.mxu0 %v3363_v40 }
0x1035   :  { %v1268_v46 = vrot.slane %v1258_v41, 2  ;;  %v1287_v47 = vrot.slane %v1258_v41, 6  ;;  %v1262_v48 = vadd.f32 %v1261_v45, %v1173_v39  ;;  %v1263_v49 = vpop.f32.mrb[23].mxu1  ;;  %3078 = vmatprep.mubr.msk.bf16.mxu0 %vm3364_vm14, %v3363_v40 }
0x1036   :  { %v1269_v50 = vrot.slane %v1260_v44, 2  ;;  %v1288_v5 = vrot.slane %v1260_v44, 6  ;;  %v1264_v51 = vadd.f32 %v1263_v49, %v1177_v42  ;;  %v3233_v49 = vld [vmem:[%s4161_s7 + $0x8] sm:$0xff]  }
0x1037   :  { %v1272_v52 = vsel %vm3524_vm9, %v1262_v48, %v1268_v46  ;;  %v1291_v16 = vsel %vm3524_vm9, %v1262_v48, %v1287_v47  ;;  %v1328_v14 = vrot.slane %v1262_v48, 2  ;;  %v1347_v18 = vrot.slane %v1262_v48, 6  ;;  %v3232_v47 = vld [vmem:[%s4161_s7] sm:$0xff]  }
0x1038   :  { %v1273_v6 = vsel %vm3528_vm10, %v1264_v51, %v1269_v50  ;;  %v1292_v7 = vsel %vm3528_vm10, %v1264_v51, %v1288_v5  ;;  %v1329_v53 = vrot.slane %v1264_v51, 2  ;;  %v1348_v8 = vrot.slane %v1264_v51, 6  ;;  %v3234_v50 = vld [vmem:[%s4161_s7 + $0x10] sm:$0xff]   ;;  %v3235_v5 = vld [vmem:[%s4161_s7 + $0x18] sm:$0xff]  }
0x1039   :  { %v1332_v9 = vsel %vm3524_vm9, %v1258_v41, %v1328_v14  ;;  %v1351_v10 = vsel %vm3524_vm9, %v1258_v41, %v1347_v18  ;;  %v1276_v54 = vcombine.high %v1272_v52, %v1273_v6  ;;  %v1295_v11 = vcombine.high %v1291_v16, %v1292_v7 }
0x103a   :  { %v1305_v55 = vcombine.low %v1272_v52, %v1273_v6  ;;  %v1316_v56 = vcombine.low %v1291_v16, %v1292_v7  ;;  %v1333_v57 = vsel %vm3528_vm10, %v1260_v44, %v1329_v53  ;;  %v1352_v58 = vsel %vm3528_vm10, %v1260_v44, %v1348_v8 }
0x103b   :  { %v1283_v4 = vrot.slane %v1276_v54, %v3533_v35  ;;  %2952 = vst.sshfl [vmem:[#allocation2 + $0x4] sm:$0x33 pattern:$0x76325410] %v1295_v11  ;;  %v1336_v0 = vcombine.high %v1332_v9, %v1333_v57  ;;  %v1355_v60 = vcombine.high %v1351_v10, %v1352_v58  ;;  %v1365_v61 = vcombine.low %v1332_v9, %v1333_v57 }
0x103c   :  { %v1312_v1 = vrot.slane %v1305_v55, %v3533_v35  ;;  %2953 = vst.sshfl [vmem:[#allocation2 + $0xc] sm:$0x33 pattern:$0x76325410] %v1316_v56  ;;  %v1376_v27 = vcombine.low %v1351_v10, %v1352_v58 }
0x103d   :  { %v1284_v63 = vcombine.high %v1283_v4, %v1283_v4  ;;  %v1343_v3 = vrot.slane %v1336_v0, %v3533_v35  ;;  %2954 = vst.sshfl [vmem:[#allocation2 + $0x14] sm:$0x33 pattern:$0x76325410] %v1355_v60  ;;  %v1372_v12 = vrot.slane %v1365_v61, %v3533_v35 }
0x103e   :  { %v1313_v13 = vcombine.high %v1312_v1, %v1312_v1  ;;  %2955 = vst.sshfl [vmem:[#allocation2 + $0x1c] sm:$0x33 pattern:$0x76325410] %v1376_v27  ;;  %v3236_v1 = vld [vmem:[%s4161_s7 + $0x20] sm:$0xff]   ;;  %v3237_v27 = vld [vmem:[%s4161_s7 + $0x28] sm:$0xff]  }
0x103f   :  { %1286 = vst [vmem:[#allocation2] sm:$0xf] %v1284_v63  ;;  %v1344_v33 = vcombine.high %v1343_v3, %v1343_v3  ;;  %v1373_v19 = vcombine.high %v1372_v12, %v1372_v12  ;;  %3071 = vmatpush3.bf16.msra.mxu0 %v3236_v1  ;;  %v3238_v63 = vld [vmem:[%s4161_s7 + $0x30] sm:$0xff]   ;;  %v3239_v3 = vld [vmem:[%s4161_s7 + $0x38] sm:$0xff]  }
0x1040   :  { %1315 = vst [vmem:[#allocation2 + $0x8] sm:$0xf] %v1313_v13  ;;  %3072 = vmatprep.subr.bf16.mxu0 %v3363_v40 }
0x1041   :  { %1346 = vst [vmem:[#allocation2 + $0x10] sm:$0xf] %v1344_v33  ;;  %1375 = vst [vmem:[#allocation2 + $0x18] sm:$0xf] %v1373_v19 }
0x1042   :  { %v1525_v7 = vld [vmem:[#allocation2 + $0x4] sm:$0xf] }
0x1043   :  { %3073 = vmatpush3.bf16.msra.mxu0 %v3237_v27 }
0x1044   :  { %3074 = vmatprep.subr.bf16.mxu0 %v3363_v40 }
0x1046   :  { %v1386_v26 = vld [vmem:[#allocation2] sm:$0xf] }
0x1047   :  { %v1479_v28 = vadd.f32 %v1477_v22, %v1386_v26  ;;  %3075 = vmatpush3.bf16.msra.mxu0 %v3238_v63 }
0x1048   :  { %3076 = vmatprep.subr.bf16.mxu0 %v3363_v40 }
0x1049   :  { %3304 = vtanh.f32 %v1479_v28 }
0x104b   :  { %3077 = vmatpush3.bf16.msra.mxu0 %v3239_v3  ;;  %v1934_v3 = vld [vmem:[#allocation2 + $0xc] sm:$0xf] }
0x104c   :  { %1765 = vmatprep.subr.bf16.mxu0 %v3727_v59 }
0x1053   :  { %v3305_v29 = vpop.eup %3304 }
0x1054   :  { %v1481_v30 = vmul.f32 0.5, %v3305_v29  ;;  %v1490_v32 = vrot.slane %v3305_v29, %v3533_v35 }
0x1056   :  { %v1482_v31 = vadd.f32 0.5, %v1481_v30  ;;  %v1491_v36 = vcombine.high %v1490_v32, %v1490_v32 }
0x1058   :  { %v1501_v34 = vrot.slane %v1482_v31, %v3533_v35 }
0x105a   :  { %v1502_v38 = vcombine.high %v1501_v34, %v1501_v34  ;;  %v1507_v37 = vmul.f32 0.0, %v1501_v34 }
0x105c   :  { %v1506_v39 = vsel %vm46_vm3, %v1491_v36, %v1502_v38 }
0x105d   :  { %v1508_v42 = vmul.f32 %v1506_v39, %v1501_v34 }
0x105f   :  { %1510 = vrot.lane.b32.xlu1 %v1508_v42, %s3362_s2 }
0x10d1   :  { %v1511_v41 = vpop.permute.xlu1 %1510 }
0x10d2   :  { %v1513_v43 = vadd.f32 %v1511_v41, %v1507_v37 }
0x10d4   :  { %3306 = vtanh.f32 %v1513_v43 }
0x10de   :  { %v3307_v44 = vpop.eup %3306 }
0x10df   :  { %v1515_v45 = vmul.f32 %v3307_v44, %v1506_v39 }
0x10e1   :  { %v1516_v46 = vpack.c.bf16 %v1515_v45, %v1515_v45 }
0x10e3   :  { %1527 = vrot.lane.b32.xlu0 %v1516_v46, %s3362_s2 }
0x1155   :  { %v1528_v48 = vpop.permute.xlu0 %1527 }
0x1156   :  { %2964 = vmatmul.mubr.msk.bf16.vlgmr.msra.gmra.mrb[24].mxu1 %vm327_vm11, %v1528_v48 }
0x1157   :  { %3083 = vmatpush3.bf16.msra.mxu1 %v3232_v47  ;;  %3090 = vmatprep.mubr.msk.bf16.mxu1 %vm3364_vm14, %v3363_v40 }
0x1158   :  { %3084 = vmatprep.subr.bf16.mxu1 %v3363_v40 }
0x115b   :  { %3085 = vmatpush3.bf16.msra.mxu1 %v3233_v49 }
0x115c   :  { %3086 = vmatprep.subr.bf16.mxu1 %v3363_v40 }
0x115f   :  { %3087 = vmatpush3.bf16.msra.mxu1 %v3234_v50 }
0x1160   :  { %3088 = vmatprep.subr.bf16.mxu1 %v3363_v40 }
0x1163   :  { %3089 = vmatpush3.bf16.msra.mxu1 %v3235_v5 }
0x1164   :  { %3094 = vmatprep.subr.bf16.mxu1 %v3363_v40 }
0x1166   :  { %3091 = vmatmul.mubr.msk.bf16.vlgmr.msra.gmra.mrb[28].mxu1 %vm327_vm11, %v1528_v48 }
0x1167   :  { %3102 = vmatprep.mubr.msk.bf16.mxu1 %vm3364_vm14, %v3363_v40 }
0x1229   :  { %v1566_v51 = vpop.f32.mrb[24].mxu1 }
0x122a   :  { %v1568_v52 = vpop.f32.mrb[25].mxu1 }
0x122b   :  { %v1575_v16 = vcombine.low %v1566_v51, %v1568_v52  ;;  %v1570_v14 = vpop.f32.mrb[26].mxu1 }
0x122c   :  { %v1571_v18 = vpop.f32.mrb[27].mxu1  ;;  %v3241_v14 = vld [vmem:[%s4161_s7 + $0x48] sm:$0xff]  }
0x122d   :  { %v1582_v6 = vrot.slane %v1575_v16, %v3533_v35  ;;  %v3240_v16 = vld [vmem:[%s4161_s7 + $0x40] sm:$0xff]   ;;  %v3242_v18 = vld [vmem:[%s4161_s7 + $0x50] sm:$0xff]  }
0x122e   :  { %3095 = vmatpush3.bf16.msra.mxu1 %v3240_v16 }
0x122f   :  { %v1584_v53 = vadd.f32 %v1582_v6, %v1525_v7  ;;  %3096 = vmatprep.subr.bf16.mxu1 %v3363_v40  ;;  %v3243_v6 = vld [vmem:[%s4161_s7 + $0x58] sm:$0xff]  }
0x1231   :  { %3308 = vtanh.f32 %v1584_v53 }
0x1232   :  { %3097 = vmatpush3.bf16.msra.mxu1 %v3241_v14 }
0x1233   :  { %3098 = vmatprep.subr.bf16.mxu1 %v3363_v40 }
0x1236   :  { %3099 = vmatpush3.bf16.msra.mxu1 %v3242_v18 }
0x1237   :  { %3100 = vmatprep.subr.bf16.mxu1 %v3363_v40 }
0x1239   :  { %v1758_v8 = vpop.f32.mrb[28].mxu1 }
0x123a   :  { %v3092_v9 = vpop.f32.mrb[29].mxu1  ;;  %3101 = vmatpush3.bf16.msra.mxu1 %v3243_v6  ;;  %v2104_v6 = vld [vmem:[#allocation2 + $0x10] sm:$0xf] }
0x123b   :  { %v3309_v10 = vpop.eup %3308  ;;  %v1761_v54 = vpop.f32.mrb[30].mxu1  ;;  %3106 = vmatprep.subr.bf16.mxu1 %v3363_v40 }
0x123c   :  { %v3093_v11 = vpop.f32.mrb[31].mxu1  ;;  %v1586_v55 = vmul.f32 0.5, %v3309_v10  ;;  %v1595_v57 = vrot.slane %v3309_v10, %v3533_v35 }
0x123e   :  { %v1587_v56 = vadd.f32 0.5, %v1586_v55  ;;  %v1596_v4 = vcombine.high %v1595_v57, %v1595_v57 }
0x1240   :  { %v1606_v58 = vrot.slane %v1587_v56, %v3533_v35 }
0x1242   :  { %v1607_v0 = vcombine.high %v1606_v58, %v1606_v58  ;;  %v1612_v12 = vmul.f32 %v1606_v58, %v1513_v43  ;;  %v1764_v43 = vld [vmem:[#allocation2 + $0x8] sm:$0xf] }
0x1244   :  { %v1611_v60 = vsel %vm46_vm3, %v1596_v4, %v1607_v0 }
0x1245   :  { %v1613_v61 = vmul.f32 %v1611_v60, %v1606_v58 }
0x1247   :  { %1615 = vrot.lane.b32.xlu1 %v1613_v61, %s3362_s2 }
0x12b9   :  { %v1616_v13 = vpop.permute.xlu1 %1615 }
0x12ba   :  { %v3881_v33 = vadd.f32 %v1616_v13, %v1612_v12 }
0x12bc   :  { %3310 = vtanh.f32 %v3881_v33 }
0x12c6   :  { %v3311_v19 = vpop.eup %3310 }
0x12c7   :  { %v1620_v22 = vmul.f32 %v3311_v19, %v1611_v60 }
0x12c9   :  { %v1621_v26 = vpack.c.bf16 %v1620_v22, %v1620_v22 }
0x12cb   :  { %1631 = vrot.lane.b32.xlu0 %v1621_v26, %s3362_s2 }
0x133d   :  { %v1632_v28 = vpop.permute.xlu0 %1631 }
0x133e   :  { %3079 = vmatmul.mubr.msk.bf16.vlgmr.msra.gmra.mrb[20].mxu0 %vm327_vm11, %v1632_v28 }
0x133f   :  { %1766 = vmatpush1.bf16.msra.mxu0 %v3732_v62  ;;  %1797 = vmatprep.mubr.bf16.mxu0 %v3360_v2 }
0x1340   :  { %1767 = vmatprep.subr.bf16.mxu0 %v3751_v17 }
0x1343   :  { %1768 = vmatpush1.bf16.msra.mxu0 %v3758_v20 }
0x1344   :  { %1769 = vmatprep.subr.bf16.mxu0 %v3763_v21 }
0x1347   :  { %1770 = vmatpush1.bf16.msra.mxu0 %v3770_v23 }
0x1348   :  { %1771 = vmatprep.subr.bf16.mxu0 %v3777_v24 }
0x134b   :  { %1772 = vmatpush1.bf16.msra.mxu0 %v3783_v25 }
0x134c   :  { %1935 = vmatprep.subr.bf16.mxu0 %v3727_v59 }
0x134e   :  { %2975 = vmatmul.mubr.msk.bf16.vlgmr.msra.gmra.mrb[24].mxu0 %vm327_vm11, %v1632_v28 }
0x134f   :  { %1936 = vmatpush1.bf16.msra.mxu0 %v3732_v62  ;;  %1967 = vmatprep.mubr.bf16.mxu0 %v3360_v2 }
0x1350   :  { %1937 = vmatprep.subr.bf16.mxu0 %v3751_v17 }
0x1353   :  { %1938 = vmatpush1.bf16.msra.mxu0 %v3758_v20 }
0x1354   :  { %1939 = vmatprep.subr.bf16.mxu0 %v3763_v21 }
0x1357   :  { %1940 = vmatpush1.bf16.msra.mxu0 %v3770_v23 }
0x1358   :  { %1941 = vmatprep.subr.bf16.mxu0 %v3777_v24 }
0x135b   :  { %1942 = vmatpush1.bf16.msra.mxu0 %v3783_v25 }
0x135c   :  { %2105 = vmatprep.subr.bf16.mxu0 %v3727_v59 }
0x1411   :  { %v1694_v29 = vpop.f32.mrb[20].mxu0 }
0x1412   :  { %v1759_v30 = vadd.f32 %v1758_v8, %v1694_v29  ;;  %v3080_v31 = vpop.f32.mrb[21].mxu0 }
0x1413   :  { %v1697_v32 = vpop.f32.mrb[22].mxu0 }
0x1414   :  { %v3081_v34 = vpop.f32.mrb[23].mxu0  ;;  %v3244_v32 = vld [vmem:[%s4161_s7 + $0x60] sm:$0xff]  }
0x1415   :  { %v3245_v34 = vld [vmem:[%s4161_s7 + $0x68] sm:$0xff]  }
0x1421   :  { %v1799_v36 = vpop.f32.mrb[24].mxu0 }
0x1422   :  { %v1801_v38 = vpop.f32.mrb[25].mxu0 }
0x1423   :  { %v1808_v39 = vcombine.low %v1799_v36, %v1801_v38  ;;  %v1803_v42 = vpop.f32.mrb[26].mxu0  ;;  %v3246_v36 = vld [vmem:[%s4161_s7 + $0x70] sm:$0xff]   ;;  %v3247_v38 = vld [vmem:[%s4161_s7 + $0x78] sm:$0xff]  }
0x1424   :  { %v1804_v37 = vpop.f32.mrb[27].mxu0 }
0x1425   :  { %v1815_v41 = vrot.slane %v1808_v39, %v3533_v35 }
0x1427   :  { %v1817_v44 = vadd.f32 %v1815_v41, %v1764_v43 }
0x1429   :  { %3312 = vtanh.f32 %v1817_v44 }
0x1433   :  { %v3313_v45 = vpop.eup %3312 }
0x1434   :  { %v1819_v46 = vmul.f32 0.5, %v3313_v45  ;;  %v1828_v48 = vrot.slane %v3313_v45, %v3533_v35 }
0x1436   :  { %v1820_v47 = vadd.f32 0.5, %v1819_v46  ;;  %v1829_v50 = vcombine.high %v1828_v48, %v1828_v48 }
0x1438   :  { %v1839_v49 = vrot.slane %v1820_v47, %v3533_v35 }
0x143a   :  { %v1840_v5 = vcombine.high %v1839_v49, %v1839_v49  ;;  %v1845_v7 = vmul.f32 %v1839_v49, %v3881_v33 }
0x143c   :  { %v1844_v51 = vsel %vm46_vm3, %v1829_v50, %v1840_v5 }
0x143d   :  { %v1846_v52 = vmul.f32 %v1844_v51, %v1839_v49 }
0x143f   :  { %1848 = vrot.lane.b32.xlu1 %v1846_v52, %s3362_s2 }
0x14b1   :  { %v1849_v53 = vpop.permute.xlu1 %1848 }
0x14b2   :  { %v1851_v8 = vadd.f32 %v1849_v53, %v1845_v7 }
0x14b4   :  { %3314 = vtanh.f32 %v1851_v8 }
0x14be   :  { %v3315_v9 = vpop.eup %3314 }
0x14bf   :  { %v1853_v10 = vmul.f32 %v3315_v9, %v1844_v51 }
0x14c1   :  { %v1854_v54 = vpack.c.bf16 %v1853_v10, %v1853_v10 }
0x14c3   :  { %1864 = vrot.lane.b32.xlu0 %v1854_v54, %s3362_s2 }
0x1535   :  { %v1865_v11 = vpop.permute.xlu0 %1864 }
0x1536   :  { %3103 = vmatmul.mubr.msk.bf16.vlgmr.msra.gmra.mrb[32].mxu1 %vm327_vm11, %v1865_v11  ;;  %2981 = vmatmul.mubr.msk.bf16.vlgmr.msra.gmra.mrb[28].mxu0 %vm327_vm11, %v1865_v11 }
0x1537   :  { %2106 = vmatpush1.bf16.msra.mxu0 %v3732_v62  ;;  %3114 = vmatprep.mubr.msk.bf16.mxu1 %vm3364_vm14, %v3363_v40 }
0x1538   :  { %2107 = vmatprep.subr.bf16.mxu0 %v3751_v17  ;;  %2137 = vmatprep.mubr.bf16.mxu0 %v3360_v2 }
0x1539   :  { %3107 = vmatpush3.bf16.msra.mxu1 %v3244_v32 }
0x153a   :  { %3108 = vmatprep.subr.bf16.mxu1 %v3363_v40 }
0x153b   :  { %2108 = vmatpush1.bf16.msra.mxu0 %v3758_v20 }
0x153c   :  { %2109 = vmatprep.subr.bf16.mxu0 %v3763_v21 }
0x153d   :  { %3109 = vmatpush3.bf16.msra.mxu1 %v3245_v34 }
0x153e   :  { %3110 = vmatprep.subr.bf16.mxu1 %v3363_v40 }
0x153f   :  { %2110 = vmatpush1.bf16.msra.mxu0 %v3770_v23 }
0x1540   :  { %2111 = vmatprep.subr.bf16.mxu0 %v3777_v24 }
0x1541   :  { %3111 = vmatpush3.bf16.msra.mxu1 %v3246_v36 }
0x1542   :  { %3112 = vmatprep.subr.bf16.mxu1 %v3363_v40 }
0x1543   :  { %2112 = vmatpush1.bf16.msra.mxu0 %v3783_v25 }
0x1544   :  { %2275 = vmatprep.subr.bf16.mxu0 %v3727_v59 }
0x1545   :  { %3113 = vmatpush3.bf16.msra.mxu1 %v3247_v38  ;;  %v2274_v38 = vld [vmem:[#allocation2 + $0x14] sm:$0xf] }
0x1546   :  { %3118 = vmatprep.subr.bf16.mxu1 %v3363_v40 }
0x1609   :  { %v1927_v55 = vpop.f32.mrb[32].mxu1  ;;  %v1969_v56 = vpop.f32.mrb[28].mxu0 }
0x160a   :  { %v1933_v57 = vadd.f32 %v1927_v55, %v1759_v30  ;;  %v3104_v58 = vpop.f32.mrb[33].mxu1  ;;  %v1971_v4 = vpop.f32.mrb[29].mxu0 }
0x160b   :  { %v1978_v0 = vcombine.low %v1969_v56, %v1971_v4  ;;  %v1930_v60 = vpop.f32.mrb[34].mxu1  ;;  %v1973_v61 = vpop.f32.mrb[30].mxu0  ;;  %v3248_v58 = vld [vmem:[%s4161_s7 + $0x80] sm:$0xff]   ;;  %v3249_v4 = vld [vmem:[%s4161_s7 + $0x88] sm:$0xff]  }
0x160c   :  { %v3105_v1 = vpop.f32.mrb[35].mxu1  ;;  %v1974_v27 = vpop.f32.mrb[31].mxu0  ;;  %v3251_v60 = vld [vmem:[%s4161_s7 + $0x98] sm:$0xff]  }
0x160d   :  { %v1985_v63 = vrot.slane %v1978_v0, %v3533_v35  ;;  %v3250_v0 = vld [vmem:[%s4161_s7 + $0x90] sm:$0xff]  }
0x160f   :  { %v1987_v12 = vadd.f32 %v1985_v63, %v1934_v3 }
0x1611   :  { %3316 = vtanh.f32 %v1987_v12 }
0x161b   :  { %v3317_v13 = vpop.eup %3316 }
0x161c   :  { %v1989_v33 = vmul.f32 0.5, %v3317_v13  ;;  %v1998_v22 = vrot.slane %v3317_v13, %v3533_v35 }
0x161e   :  { %v1990_v19 = vadd.f32 0.5, %v1989_v33  ;;  %v1999_v28 = vcombine.high %v1998_v22, %v1998_v22 }
0x1620   :  { %v2009_v26 = vrot.slane %v1990_v19, %v3533_v35 }
0x1622   :  { %v2010_v29 = vcombine.high %v2009_v26, %v2009_v26  ;;  %v2015_v39 = vmul.f32 %v2009_v26, %v1851_v8 }
0x1624   :  { %v2014_v30 = vsel %vm46_vm3, %v1999_v28, %v2010_v29 }
0x1625   :  { %v2016_v31 = vmul.f32 %v2014_v30, %v2009_v26 }
0x1627   :  { %2018 = vrot.lane.b32.xlu1 %v2016_v31, %s3362_s2 }
0x1699   :  { %v2019_v42 = vpop.permute.xlu1 %2018 }
0x169a   :  { %v2021_v37 = vadd.f32 %v2019_v42, %v2015_v39 }
0x169c   :  { %3318 = vtanh.f32 %v2021_v37 }
0x16a6   :  { %v3319_v41 = vpop.eup %3318 }
0x16a7   :  { %v2023_v43 = vmul.f32 %v3319_v41, %v2014_v30 }
0x16a9   :  { %v2024_v44 = vpack.c.bf16 %v2023_v43, %v2023_v43 }
0x16ab   :  { %2034 = vrot.lane.b32.xlu0 %v2024_v44, %s3362_s2 }
0x171d   :  { %v2035_v45 = vpop.permute.xlu0 %2034 }
0x171e   :  { %3115 = vmatmul.mubr.msk.bf16.vlgmr.msra.gmra.mrb[36].mxu1 %vm327_vm11, %v2035_v45  ;;  %2987 = vmatmul.mubr.msk.bf16.vlgmr.msra.gmra.mrb[32].mxu0 %vm327_vm11, %v2035_v45 }
0x171f   :  { %2276 = vmatpush1.bf16.msra.mxu0 %v3732_v62  ;;  %3126 = vmatprep.mubr.msk.bf16.mxu1 %vm3364_vm14, %v3363_v40 }
0x1720   :  { %2277 = vmatprep.subr.bf16.mxu0 %v3751_v17  ;;  %2307 = vmatprep.mubr.bf16.mxu0 %v3360_v2 }
0x1721   :  { %3119 = vmatpush3.bf16.msra.mxu1 %v3248_v58 }
0x1722   :  { %3120 = vmatprep.subr.bf16.mxu1 %v3363_v40 }
0x1723   :  { %2278 = vmatpush1.bf16.msra.mxu0 %v3758_v20 }
0x1724   :  { %2279 = vmatprep.subr.bf16.mxu0 %v3763_v21 }
0x1725   :  { %3121 = vmatpush3.bf16.msra.mxu1 %v3249_v4 }
0x1726   :  { %3122 = vmatprep.subr.bf16.mxu1 %v3363_v40 }
0x1727   :  { %2280 = vmatpush1.bf16.msra.mxu0 %v3770_v23 }
0x1728   :  { %2281 = vmatprep.subr.bf16.mxu0 %v3777_v24 }
0x1729   :  { %3123 = vmatpush3.bf16.msra.mxu1 %v3250_v0 }
0x172a   :  { %3124 = vmatprep.subr.bf16.mxu1 %v3363_v40 }
0x172b   :  { %2282 = vmatpush1.bf16.msra.mxu0 %v3783_v25 }
0x172c   :  { %2445 = vmatprep.subr.bf16.mxu0 %v3727_v59 }
0x172d   :  { %3125 = vmatpush3.bf16.msra.mxu1 %v3251_v60 }
0x172e   :  { %3130 = vmatprep.subr.bf16.mxu1 %v3363_v40 }
0x17f1   :  { %v2097_v46 = vpop.f32.mrb[36].mxu1  ;;  %v2139_v47 = vpop.f32.mrb[32].mxu0 }
0x17f2   :  { %v2103_v48 = vadd.f32 %v2097_v46, %v1933_v57  ;;  %v3116_v49 = vpop.f32.mrb[37].mxu1  ;;  %v2141_v50 = vpop.f32.mrb[33].mxu0 }
0x17f3   :  { %v2148_v5 = vcombine.low %v2139_v47, %v2141_v50  ;;  %v2100_v51 = vpop.f32.mrb[38].mxu1  ;;  %v2143_v52 = vpop.f32.mrb[34].mxu0  ;;  %v3253_v49 = vld [vmem:[%s4161_s7 + $0xa8] sm:$0xff]   ;;  %v3254_v50 = vld [vmem:[%s4161_s7 + $0xb0] sm:$0xff]  }
0x17f4   :  { %v3117_v16 = vpop.f32.mrb[39].mxu1  ;;  %v2144_v14 = vpop.f32.mrb[35].mxu0 }
0x17f5   :  { %v2155_v18 = vrot.slane %v2148_v5, %v3533_v35  ;;  %v3255_v5 = vld [vmem:[%s4161_s7 + $0xb8] sm:$0xff]  }
0x17f7   :  { %v2157_v7 = vadd.f32 %v2155_v18, %v2104_v6 }
0x17f9   :  { %3320 = vtanh.f32 %v2157_v7 }
0x1803   :  { %v3321_v53 = vpop.eup %3320 }
0x1804   :  { %v2159_v8 = vmul.f32 0.5, %v3321_v53  ;;  %v2168_v10 = vrot.slane %v3321_v53, %v3533_v35 }
0x1806   :  { %v2160_v9 = vadd.f32 0.5, %v2159_v8  ;;  %v2169_v11 = vcombine.high %v2168_v10, %v2168_v10 }
0x1808   :  { %v2179_v54 = vrot.slane %v2160_v9, %v3533_v35 }
0x180a   :  { %v2180_v55 = vcombine.high %v2179_v54, %v2179_v54  ;;  %v2185_v61 = vmul.f32 %v2179_v54, %v2021_v37 }
0x180c   :  { %v2184_v56 = vsel %vm46_vm3, %v2169_v11, %v2180_v55  ;;  %v2444_v55 = vld [vmem:[#allocation2 + $0x18] sm:$0xf] }
0x180d   :  { %v2186_v57 = vmul.f32 %v2184_v56, %v2179_v54 }
0x180f   :  { %2188 = vrot.lane.b32.xlu1 %v2186_v57, %s3362_s2 }
0x1881   :  { %v2189_v1 = vpop.permute.xlu1 %2188 }
0x1882   :  { %v2191_v27 = vadd.f32 %v2189_v1, %v2185_v61  ;;  %v3256_v1 = vld [vmem:[%s4161_s7 + $0xc0] sm:$0xff]  }
0x1884   :  { %3322 = vtanh.f32 %v2191_v27 }
0x188e   :  { %v3323_v63 = vpop.eup %3322 }
0x188f   :  { %v2193_v3 = vmul.f32 %v3323_v63, %v2184_v56  ;;  %v3258_v63 = vld [vmem:[%s4161_s7 + $0xd0] sm:$0xff]  }
0x1891   :  { %v2194_v12 = vpack.c.bf16 %v2193_v3, %v2193_v3  ;;  %v3259_v3 = vld [vmem:[%s4161_s7 + $0xd8] sm:$0xff]  }
0x1893   :  { %2204 = vrot.lane.b32.xlu0 %v2194_v12, %s3362_s2 }
0x1905   :  { %v2205_v13 = vpop.permute.xlu0 %2204 }
0x1906   :  { %3127 = vmatmul.mubr.msk.bf16.vlgmr.msra.gmra.mrb[40].mxu1 %vm327_vm11, %v2205_v13  ;;  %2993 = vmatmul.mubr.msk.bf16.vlgmr.msra.gmra.mrb[36].mxu0 %vm327_vm11, %v2205_v13 }
0x1907   :  { %2446 = vmatpush1.bf16.msra.mxu0 %v3732_v62  ;;  %3138 = vmatprep.mubr.msk.bf16.mxu1 %vm3364_vm14, %v3363_v40 }
0x1908   :  { %2447 = vmatprep.subr.bf16.mxu0 %v3751_v17  ;;  %2477 = vmatprep.mubr.bf16.mxu0 %v3360_v2 }
0x190b   :  { %2448 = vmatpush1.bf16.msra.mxu0 %v3758_v20 }
0x190c   :  { %2449 = vmatprep.subr.bf16.mxu0 %v3763_v21 }
0x190f   :  { %2450 = vmatpush1.bf16.msra.mxu0 %v3770_v23 }
0x1910   :  { %2451 = vmatprep.subr.bf16.mxu0 %v3777_v24 }
0x1913   :  { %2452 = vmatpush1.bf16.msra.mxu0 %v3783_v25 }
0x1914   :  { %2615 = vmatprep.subr.bf16.mxu0 %v3727_v59 }
0x19d9   :  { %v2267_v33 = vpop.f32.mrb[40].mxu1  ;;  %v2309_v19 = vpop.f32.mrb[36].mxu0 }
0x19da   :  { %v2273_v22 = vadd.f32 %v2267_v33, %v2103_v48  ;;  %v3128_v26 = vpop.f32.mrb[41].mxu1  ;;  %v2311_v28 = vpop.f32.mrb[37].mxu0  ;;  %v3252_v48 = vld [vmem:[%s4161_s7 + $0xa0] sm:$0xff]  }
0x19db   :  { %v2318_v29 = vcombine.low %v2309_v19, %v2311_v28  ;;  %v2270_v30 = vpop.f32.mrb[42].mxu1  ;;  %v2313_v31 = vpop.f32.mrb[38].mxu0  ;;  %3131 = vmatpush3.bf16.msra.mxu1 %v3252_v48 }
0x19dc   :  { %v3129_v32 = vpop.f32.mrb[43].mxu1  ;;  %v2314_v34 = vpop.f32.mrb[39].mxu0  ;;  %3132 = vmatprep.subr.bf16.mxu1 %v3363_v40 }
0x19dd   :  { %v2325_v36 = vrot.slane %v2318_v29, %v3533_v35 }
0x19df   :  { %v2327_v39 = vadd.f32 %v2325_v36, %v2274_v38  ;;  %3133 = vmatpush3.bf16.msra.mxu1 %v3253_v49 }
0x19e0   :  { %3134 = vmatprep.subr.bf16.mxu1 %v3363_v40 }
0x19e1   :  { %3324 = vtanh.f32 %v2327_v39 }
0x19e3   :  { %3135 = vmatpush3.bf16.msra.mxu1 %v3254_v50 }
0x19e4   :  { %3136 = vmatprep.subr.bf16.mxu1 %v3363_v40 }
0x19e7   :  { %3137 = vmatpush3.bf16.msra.mxu1 %v3255_v5 }
0x19e8   :  { %3142 = vmatprep.subr.bf16.mxu1 %v3363_v40 }
0x19eb   :  { %v3325_v42 = vpop.eup %3324 }
0x19ec   :  { %v2329_v37 = vmul.f32 0.5, %v3325_v42  ;;  %v2338_v59 = vrot.slane %v3325_v42, %v3533_v35 }
0x19ee   :  { %v2330_v41 = vadd.f32 0.5, %v2329_v37  ;;  %v2339_v44 = vcombine.high %v2338_v59, %v2338_v59  ;;  %v2614_v59 = vld [vmem:[#allocation2 + $0x1c] sm:$0xf] }
0x19f0   :  { %v2349_v43 = vrot.slane %v2330_v41, %v3533_v35 }
0x19f2   :  { %v2350_v45 = vcombine.high %v2349_v43, %v2349_v43  ;;  %v2355_v51 = vmul.f32 %v2349_v43, %v2191_v27  ;;  %v3257_v27 = vld [vmem:[%s4161_s7 + $0xc8] sm:$0xff]  }
0x19f4   :  { %v2354_v46 = vsel %vm46_vm3, %v2339_v44, %v2350_v45 }
0x19f5   :  { %v2356_v47 = vmul.f32 %v2354_v46, %v2349_v43 }
0x19f7   :  { %2358 = vrot.lane.b32.xlu1 %v2356_v47, %s3362_s2 }
0x1a69   :  { %v2359_v52 = vpop.permute.xlu1 %2358 }
0x1a6a   :  { %v2361_v16 = vadd.f32 %v2359_v52, %v2355_v51  ;;  %v3260_v52 = vld [vmem:[%s4161_s7 + $0xe0] sm:$0xff]  }
0x1a6c   :  { %3326 = vtanh.f32 %v2361_v16 }
0x1a76   :  { %v3327_v14 = vpop.eup %3326 }
0x1a77   :  { %v2363_v18 = vmul.f32 %v3327_v14, %v2354_v46 }
0x1a79   :  { %v2364_v6 = vpack.c.bf16 %v2363_v18, %v2363_v18 }
0x1a7b   :  { %2374 = vrot.lane.b32.xlu0 %v2364_v6, %s3362_s2 }
0x1aed   :  { %v2375_v7 = vpop.permute.xlu0 %2374 }
0x1aee   :  { %3139 = vmatmul.mubr.msk.bf16.vlgmr.msra.gmra.mrb[44].mxu1 %vm327_vm11, %v2375_v7  ;;  %2999 = vmatmul.mubr.msk.bf16.vlgmr.msra.gmra.mrb[40].mxu0 %vm327_vm11, %v2375_v7  ;;  %v3264_v7 = vld [vmem:[%s4163_s9] sm:$0xff]  }
0x1aef   :  { %2616 = vmatpush1.bf16.msra.mxu0 %v3732_v62  ;;  %3150 = vmatprep.mubr.msk.bf16.mxu1 %vm3364_vm14, %v3363_v40 }
0x1af0   :  { %2617 = vmatprep.subr.bf16.mxu0 %v3751_v17  ;;  %2647 = vmatprep.mubr.bf16.mxu0 %v3360_v2 }
0x1af1   :  { %3143 = vmatpush3.bf16.msra.mxu1 %v3256_v1 }
0x1af2   :  { %3144 = vmatprep.subr.bf16.mxu1 %v3363_v40 }
0x1af3   :  { %2618 = vmatpush1.bf16.msra.mxu0 %v3758_v20 }
0x1af4   :  { %2619 = vmatprep.subr.bf16.mxu0 %v3763_v21 }
0x1af5   :  { %3145 = vmatpush3.bf16.msra.mxu1 %v3257_v27 }
0x1af6   :  { %3146 = vmatprep.subr.bf16.mxu1 %v3363_v40 }
0x1af7   :  { %2620 = vmatpush1.bf16.msra.mxu0 %v3770_v23 }
0x1af8   :  { %2621 = vmatprep.subr.bf16.mxu0 %v3777_v24 }
0x1af9   :  { %3147 = vmatpush3.bf16.msra.mxu1 %v3258_v63 }
0x1afa   :  { %3148 = vmatprep.subr.bf16.mxu1 %v3363_v40 }
0x1afb   :  { %2622 = vmatpush1.bf16.msra.mxu0 %v3783_v25 }
0x1afc   :  { %3166 = vmatprep.subr.bf16.mxu0 %v3363_v40 }
0x1afd   :  { %3149 = vmatpush3.bf16.msra.mxu1 %v3259_v3 }
0x1afe   :  { %3154 = vmatprep.subr.bf16.mxu1 %v3363_v40 }
0x1bc1   :  { %v2437_v62 = vpop.f32.mrb[44].mxu1  ;;  %v2479_v53 = vpop.f32.mrb[40].mxu0 }
0x1bc2   :  { %v2443_v8 = vadd.f32 %v2437_v62, %v2273_v22  ;;  %v3140_v9 = vpop.f32.mrb[45].mxu1  ;;  %v2481_v10 = vpop.f32.mrb[41].mxu0  ;;  %v3265_v62 = vld [vmem:[%s4163_s9 + $0x8] sm:$0xff]  }
0x1bc3   :  { %v2488_v17 = vcombine.low %v2479_v53, %v2481_v10  ;;  %v2440_v54 = vpop.f32.mrb[46].mxu1  ;;  %v2483_v2 = vpop.f32.mrb[42].mxu0  ;;  %v3266_v53 = vld [vmem:[%s4163_s9 + $0x10] sm:$0xff]   ;;  %v3267_v10 = vld [vmem:[%s4163_s9 + $0x18] sm:$0xff]  }
0x1bc4   :  { %v3141_v11 = vpop.f32.mrb[47].mxu1  ;;  %v2484_v20 = vpop.f32.mrb[43].mxu0  ;;  %v3268_v54 = vld [vmem:[%s4163_s9 + $0x20] sm:$0xff]   ;;  %v3269_v2 = vld [vmem:[%s4163_s9 + $0x28] sm:$0xff]  }
0x1bc5   :  { %v2495_v21 = vrot.slane %v2488_v17, %v3533_v35  ;;  %v3270_v20 = vld [vmem:[%s4163_s9 + $0x30] sm:$0xff]  }
0x1bc7   :  { %v2497_v23 = vadd.f32 %v2495_v21, %v2444_v55  ;;  %v3271_v21 = vld [vmem:[%s4163_s9 + $0x38] sm:$0xff]   ;;  %s3365_s9 = smov [#allocation4]  }
0x1bc8   :  { %s2912_s14 = sshll.u32 %s3365_s9, 4  ;;  %s2913_s14 = int_to_ptr.vmem [resolvable:$true] %s2912_s14 }
0x1bc9   :  { %3328 = vtanh.f32 %v2497_v23  ;;  %v3011_v23 = vld [vmem:[%s4162_s8] ss:$0 sm:$0xff]  ;;  %s3336_s8 = scalar_lea.vmem %s2913_s14, 32  ;;  %p3341_p1 = scmp.lt.s32.totalorder %s2913_s14, %s2913_s14 }
0x1bca   :  { %p3337_p0 = scmp.ne.s32.totalorder %s2913_s14, %s3336_s8  ;;  %p3342_p2 = scmp.lt.s32.totalorder %s3336_s8, %s3336_s8 }
0x1bcc   :  { %p3343_p3 = por %p3342_p2, %p3341_p1 }
0x1bce   :  { %p3344_p4 = pnand %p3343_p3, %p3337_p0 }
0x1bd3   :  { %v3329_v24 = vpop.eup %3328 }
0x1bd4   :  { %v2499_v56 = vmul.f32 0.5, %v3329_v24  ;;  %v2508_v57 = vrot.slane %v3329_v24, %v3533_v35 }
0x1bd6   :  { %v2500_v25 = vadd.f32 0.5, %v2499_v56  ;;  %v2509_v4 = vcombine.high %v2508_v57, %v2508_v57 }
0x1bd8   :  { %v2519_v58 = vrot.slane %v2500_v25, %v3533_v35 }
0x1bda   :  { %v2520_v0 = vcombine.high %v2519_v58, %v2519_v58  ;;  %v2525_v12 = vmul.f32 %v2519_v58, %v2361_v16  ;;  %v3261_v16 = vld [vmem:[%s4161_s7 + $0xe8] sm:$0xff]  }
0x1bdc   :  { %v2524_v60 = vsel %vm46_vm3, %v2509_v4, %v2520_v0 }
0x1bdd   :  { %v2526_v61 = vmul.f32 %v2524_v60, %v2519_v58 }
0x1bdf   :  { %2528 = vrot.lane.b32.xlu1 %v2526_v61, %s3362_s2 }
0x1c51   :  { %v2529_v13 = vpop.permute.xlu1 %2528 }
0x1c52   :  { %v2531_v33 = vadd.f32 %v2529_v13, %v2525_v12 }
0x1c54   :  { %3330 = vtanh.f32 %v2531_v33 }
0x1c5e   :  { %v3331_v19 = vpop.eup %3330 }
0x1c5f   :  { %v2533_v22 = vmul.f32 %v3331_v19, %v2524_v60 }
0x1c61   :  { %v2534_v26 = vpack.c.bf16 %v2533_v22, %v2533_v22 }
0x1c63   :  { %2544 = vrot.lane.b32.xlu0 %v2534_v26, %s3362_s2 }
0x1cd5   :  { %v2545_v28 = vpop.permute.xlu0 %2544 }
0x1cd6   :  { %3151 = vmatmul.mubr.msk.bf16.vlgmr.msra.gmra.mrb[48].mxu1 %vm327_vm11, %v2545_v28  ;;  %3005 = vmatmul.mubr.msk.bf16.vlgmr.msra.gmra.mrb[44].mxu0 %vm327_vm11, %v2545_v28 }
0x1cd7   :  { %3162 = vmatprep.mubr.msk.bf16.mxu1 %vm3364_vm14, %v3363_v40  ;;  %3182 = vmatprep.mubr.msk.bf16.mxu0 %vm3364_vm14, %v3363_v40 }
0x1cd8   :  { %3155 = vmatpush3.bf16.msra.mxu1 %v3260_v52  ;;  %3167 = vmatpush3.bf16.msra.mxu0 %v3264_v7 }
0x1cd9   :  { %3156 = vmatprep.subr.bf16.mxu1 %v3363_v40  ;;  %3168 = vmatprep.subr.bf16.mxu0 %v3363_v40 }
0x1cdc   :  { %3157 = vmatpush3.bf16.msra.mxu1 %v3261_v16  ;;  %3169 = vmatpush3.bf16.msra.mxu0 %v3265_v62 }
0x1cdd   :  { %3158 = vmatprep.subr.bf16.mxu1 %v3363_v40  ;;  %3170 = vmatprep.subr.bf16.mxu0 %v3363_v40 }
0x1ce0   :  { %3159 = vmatpush3.bf16.msra.mxu1 %v3262_v15  ;;  %3171 = vmatpush3.bf16.msra.mxu0 %v3266_v53 }
0x1ce1   :  { %3160 = vmatprep.subr.bf16.mxu1 %v3363_v40  ;;  %3172 = vmatprep.subr.bf16.mxu0 %v3363_v40 }
0x1ce4   :  { %3173 = vmatpush3.bf16.msra.mxu0 %v3267_v10 }
0x1ce5   :  { %3174 = vmatprep.subr.bf16.mxu0 %v3363_v40 }
0x1ce8   :  { %3175 = vmatpush3.bf16.msra.mxu0 %v3268_v54 }
0x1ce9   :  { %3176 = vmatprep.subr.bf16.mxu0 %v3363_v40 }
0x1cec   :  { %3177 = vmatpush3.bf16.msra.mxu0 %v3269_v2 }
0x1ced   :  { %3178 = vmatprep.subr.bf16.mxu0 %v3363_v40 }
0x1cf0   :  { %3179 = vmatpush3.bf16.msra.mxu0 %v3270_v20 }
0x1cf1   :  { %3180 = vmatprep.subr.bf16.mxu0 %v3363_v40  ;;  %v3012_v40 = vld [vmem:[%s4164_s10] ss:$0 sm:$0xff] }
0x1cf4   :  { %3181 = vmatpush3.bf16.msra.mxu0 %v3271_v21 }
0x1da9   :  { %v2607_v29 = vpop.f32.mrb[48].mxu1  ;;  %v2649_v30 = vpop.f32.mrb[44].mxu0 }
0x1daa   :  { %v4079_v31 = vadd.f32 %v2607_v29, %v2443_v8  ;;  %v3152_v32 = vpop.f32.mrb[49].mxu1  ;;  %v2651_v34 = vpop.f32.mrb[45].mxu0 }
0x1dab   :  { %v2658_v36 = vcombine.low %v2649_v30, %v2651_v34  ;;  %v2610_v38 = vpop.f32.mrb[50].mxu1  ;;  %v2653_v39 = vpop.f32.mrb[46].mxu0 }
0x1dac   :  { %v3153_v42 = vpop.f32.mrb[51].mxu1  ;;  %v2654_v37 = vpop.f32.mrb[47].mxu0 }
0x1dad   :  { %v2665_v41 = vrot.slane %v2658_v36, %v3533_v35 }
0x1daf   :  { %v2667_v43 = vadd.f32 %v2665_v41, %v2614_v59 }
0x1db1   :  { %3332 = vtanh.f32 %v2667_v43 }
0x1dbb   :  { %v3333_v44 = vpop.eup %3332 }
0x1dbc   :  { %v2669_v45 = vmul.f32 0.5, %v3333_v44  ;;  %v2678_v47 = vrot.slane %v3333_v44, %v3533_v35 }
0x1dbe   :  { %v2670_v46 = vadd.f32 0.5, %v2669_v45  ;;  %v2679_v49 = vcombine.high %v2678_v47, %v2678_v47 }
0x1dc0   :  { %v2689_v48 = vrot.slane %v2670_v46, %v3533_v35  ;;  %v3263_v35 = vld [vmem:[%s4161_s7 + $0xf8] sm:$0xff]  }
0x1dc1   :  { %3161 = vmatpush3.bf16.msra.mxu1 %v3263_v35 }
0x1dc2   :  { %v2690_v50 = vcombine.high %v2689_v48, %v2689_v48  ;;  %v2695_v14 = vmul.f32 %v2689_v48, %v2531_v33 }
0x1dc4   :  { %v2694_v5 = vsel %vm46_vm3, %v2679_v49, %v2690_v50 }
0x1dc5   :  { %v2696_v51 = vmul.f32 %v2694_v5, %v2689_v48 }
0x1dc7   :  { %2698 = vrot.lane.b32.xlu1 %v2696_v51, %s3362_s2 }
0x1e39   :  { %v2699_v18 = vpop.permute.xlu1 %2698 }
0x1e3a   :  { %v2701_v6 = vadd.f32 %v2699_v18, %v2695_v14 }
0x1e3c   :  { %3334 = vtanh.f32 %v2701_v6 }
0x1e46   :  { %v3335_v8 = vpop.eup %3334 }
0x1e47   :  { %v2703_v9 = vmul.f32 %v3335_v8, %v2694_v5 }
0x1e49   :  { %v2704_v17 = vpack.c.bf16 %v2703_v9, %v2703_v9 }
0x1e4b   :  { %2714 = vrot.lane.b32.xlu0 %v2704_v17, %s3362_s2 }
0x1ebd   :  { %v2715_v11 = vpop.permute.xlu0 %2714 }
0x1ebe   :  { %3163 = vmatmul.mubr.msk.bf16.vlgmr.msra.gmra.mrb[52].mxu1 %vm327_vm11, %v2715_v11 }
0x1f91   :  { %v2777_v55 = vpop.f32.mrb[52].mxu1 }
0x1f92   :  { %v2783_v24 = vadd.f32 %v2777_v55, %v4079_v31  ;;  %v3164_v56 = vpop.f32.mrb[53].mxu1 }
0x1f93   :  { %v2780_v25 = vpop.f32.mrb[54].mxu1 }
0x1f94   :  { %v2791_v57 = vadd.f32 %v3011_v23, %v2783_v24  ;;  %v3165_v58 = vpop.f32.mrb[55].mxu1 }
0x1f96   :  { %v2792_v4 = vmax.f32 %v2791_v57, 0.0 }
0x1f98   :  { %v2793_v0 = vpack.c.bf16 %v2792_v4, %v2792_v4 }
0x1f9a   :  { %3183 = vmatmul.mubr.bf16.vlgmr.msra.gmra.mrb[48].mxu0 %v2793_v0 }
0x206d   :  { %v2899_v60 = vpop.f32.mrb[48].mxu0 }
0x206e   :  { %v2900_v61 = vadd.f32 %v3012_v40, %v2899_v60  ;;  %v3184_v1 = vpop.f32.mrb[49].mxu0 }
0x206f   :  { %v2902_v27 = vpop.f32.mrb[50].mxu0 }
0x2070   :  { %2905 = vst [vmem:[#allocation4] sm:$0x3] %v2900_v61  ;;  %v3185_v63 = vpop.f32.mrb[51].mxu0 }
0x2071   :  { %3347 = shalt.err (!%p3344_p4)
}
0x2072   :  { %s3348_s10 = scalar_lea.hbm %s4165_s11, 32 }
0x2073   :  { %p3349_p5 = scmp.ne.s32.totalorder %s4165_s11, %s3348_s10  ;;  %p3352_p6 = scmp.lt.u32.totalorder %s3348_s10, %s4165_s11 }
0x2075   :  { %p3354_p7 = pnand %p3352_p6, %p3349_p5 }
0x2077   :  { %3357 = shalt.err (!%p3354_p7)
}
0x2078   :  { %2915 = dma.vmem_to_hbm [thread:$0]  %s2913_s14, 32, %s4165_s11, [#allocation5]  }
0x2079   :  { %3358 = dma.done.wait [#allocation5], 32  }
0x207a   :  { %3359 = vsyncadd [#allocation5], 4294967264 }
0x207b   :  { %2919 = vsyncpa [#allocation5], 1 }

</bundles_post_ra>
